<compile_context>
chip_gen: v6e
topology: v6e:2x2x1
jax: 0.10.0
libtpu: 0.0.40
codegen_flags: <defaults>
</compile_context>

<pallas_src>
import functools

import jax
import jax.numpy as jnp
from jax.experimental import pallas as pl
from jax.experimental.pallas import tpu as pltpu

FEAT = 32          # in_chans == out_chans == 32 (hard-coded in the module)
NEG_SLOPE = 0.01   # nn.LeakyReLU default negative_slope


def fc1d_kernel(x_ref, w_ref, b_ref, o_ref, *, num_layers):
    """One packed row-tile of the Linear -> LeakyReLU -> Dropout chain.

    x_ref : [TM, PACK*32]            packed activations (PACK rows / lane-row)
    w_ref : [L, PACK*32, PACK*32]    block-diagonal weights (y = x @ w + b), bf16
    b_ref : [L, PACK*32]             lane-tiled biases, f32
    o_ref : [TM, PACK*32]            packed output tile
    """
    compute_dtype = w_ref.dtype
    b = b_ref[...].astype(jnp.float32)                 # [L, lanes]
    x = x_ref[...].astype(compute_dtype)
    for l in range(num_layers):                        # L is small: static unroll
        # MXU matmul in the weight dtype (bf16), f32 accumulation.
        y = jnp.dot(x, w_ref[l], preferred_element_type=jnp.float32)
        y = y + b[l][None, :]
        if l < num_layers - 1:
            # LeakyReLU in f32 (safe on v5e's no-bf16 VPU).  Dropout in eval
            # mode is the identity -> nothing to do.
            y = jnp.maximum(y, NEG_SLOPE * y)
            x = y.astype(compute_dtype)
        else:
            o_ref[...] = y.astype(o_ref.dtype)


def _pack_params(weights, biases, pack, compute_dtype):
    """[L,32,32]/[L,32] -> block-diag [L,pack*32,pack*32] / tiled [L,pack*32]."""
    L = weights.shape[0]
    eye = jnp.eye(pack, dtype=weights.dtype)
    # w_blk[l, p*32+i, q*32+j] = (p == q) * w[l, i, j]
    w_blk = jnp.einsum("pq,lij->lpiqj", eye, weights).reshape(
        L, pack * FEAT, pack * FEAT)
    b_blk = jnp.tile(biases, (1, pack))                 # [L, pack*32]
    return w_blk.astype(compute_dtype), b_blk.astype(jnp.float32)


def _round_up(x, m):
    return ((x + m - 1) // m) * m


def _tpu_generation():
    try:
        kind = jax.devices()[0].device_kind.lower()
    except Exception:
        return "unknown"
    if "v5 lite" in kind or "v5lite" in kind or "v5e" in kind:
        return "v5e"
    if "v6" in kind:
        return "v6e"
    if "v7" in kind or "tpu7" in kind:
        return "v7x"
    return "unknown"


# Per-generation defaults: pack (rows per lane-row), tile_m (packed rows per
# grid step) and the scoped-VMEM limit.
#   v5e : 128x128 MXU -> pack=4 (128 lanes); 128 MiB physical VMEM.
#   v6e : 256x256 MXU -> pack=8 (256 lanes); 128 MiB physical VMEM.
#   v7x : 256x256 MXU -> pack=8, but only 64 MiB VMEM/TC -> smaller tile+limit.
_DEFAULTS = {
    "v5e": dict(pack=4, tile_m=4096, vmem_limit=64 * 1024 * 1024),
    "v6e": dict(pack=8, tile_m=4096, vmem_limit=64 * 1024 * 1024),
    "v7x": dict(pack=8, tile_m=2048, vmem_limit=48 * 1024 * 1024),
    "unknown": dict(pack=8, tile_m=2048, vmem_limit=48 * 1024 * 1024),
}


def fc1d_forward(x, weights, biases, *, pack=None, tile_m=None,
                 vmem_limit_bytes=None, compute_dtype=jnp.bfloat16):
    """Apply the FC1D network to x of shape [B, C, H, W] with W == 32.

    weights: [L, 32, 32]  pre-transposed so y = x @ weights[l] + biases[l]
    biases : [L, 32]
    compute_dtype: MXU input dtype (bf16 by default; accumulation is f32).
    I/O stays in x.dtype.  # TODO(synk): optional bf16 I/O (halves HBM bytes)
    is a numerics/interface change and is intentionally not enabled here.
    """
    cfg = _DEFAULTS[_tpu_generation()]
    pack = cfg["pack"] if pack is None else pack
    tile_m = cfg["tile_m"] if tile_m is None else tile_m
    vmem_limit_bytes = (cfg["vmem_limit"] if vmem_limit_bytes is None
                        else vmem_limit_bytes)

    B, C, H, W = x.shape
    assert W == FEAT, f"last dim must be {FEAT}, got {W}"
    L = weights.shape[0]
    lanes = pack * FEAT

    n_rows = B * C * H
    x2d = x.reshape(n_rows, FEAT)

    # Packed row count must be a multiple of 8 (sublanes) so row tiles are
    # always (mult-of-8, mult-of-128).  n_rows = B*32*H is normally already a
    # multiple of pack*8, so this pad (an HBM copy) only triggers for odd shapes.
    row_align = pack * 8
    pad = (-n_rows) % row_align
    if pad:
        x2d = jnp.concatenate(
            [x2d, jnp.zeros((pad, FEAT), dtype=x2d.dtype)], axis=0)
    n_packed = x2d.shape[0] // pack             # multiple of 8
    xp = x2d.reshape(n_packed, lanes)           # free row-major reshape

    w_blk, b_blk = _pack_params(weights, biases, pack, compute_dtype)

    # Clamp the row tile so the grid has >= ~8 steps (shards rows across v7x's
    # two TensorCores and gives the pipeline room to hide DMA), but never below
    # 256 packed rows and never above the data itself.
    tm = min(tile_m, max(256, _round_up(n_packed // 8, 8)))
    tm = max(8, min(tm, n_packed))
    grid = (pl.cdiv(n_packed, tm),)             # partial edge block is masked

    kernel = functools.partial(fc1d_kernel, num_layers=L)
    x_spec = pl.BlockSpec((tm, lanes), lambda i: (i, 0))
    out_spec = pl.BlockSpec((tm, lanes), lambda i: (i, 0))

    def run(single_buffer_params):
        pm = {"pipeline_mode": pl.Buffered(1)} if single_buffer_params else {}
        w_spec = pl.BlockSpec((L, lanes, lanes), lambda i: (0, 0, 0), **pm)
        b_spec = pl.BlockSpec((L, lanes), lambda i: (0, 0), **pm)
        return pl.pallas_call(
            kernel,
            out_shape=jax.ShapeDtypeStruct((n_packed, lanes), x.dtype),
            grid=grid,
            in_specs=[x_spec, w_spec, b_spec],
            out_specs=out_spec,
            compiler_params=pltpu.CompilerParams(
                dimension_semantics=("parallel",),   # row axis shards TCs on v7x
                vmem_limit_bytes=vmem_limit_bytes),
        )(xp, w_blk, b_blk)

    try:
        # Grid-invariant params: single-buffer to drop the dead second VMEM copy.
        outp = run(single_buffer_params=True)
    except Exception:
        # Some JAX versions reject Buffered(1); default double-buffering only
        # costs ~L*lanes^2*2 extra bytes of VMEM, so fall back rather than fail.
        outp = run(single_buffer_params=False)

    out2d = outp.reshape(n_packed * pack, FEAT)
    if pad:
        out2d = out2d[:n_rows]
    return out2d.reshape(B, C, H, W)


def init_params(key, num_blocks):
    """Deterministic parameter init matching nn.Linear(32, 32) shapes.

    PyTorch Linear stores W as [out, in]; we pre-transpose to [in, out] so the
    kernel computes y = x @ W_t + b.
    """
    L = num_blocks  # (num_blocks - 1) hidden linears + 1 final linear
    bound = 1.0 / jnp.sqrt(jnp.float32(FEAT))
    ws, bs = [], []
    for _ in range(L):
        kw, kb, key = jax.random.split(key, 3)
        w = jax.random.uniform(kw, (FEAT, FEAT), jnp.float32, -bound, bound)
        b = jax.random.uniform(kb, (FEAT,), jnp.float32, -bound, bound)
        ws.append(w.T)  # [in, out]
        bs.append(b)
    return jnp.stack(ws, axis=0), jnp.stack(bs, axis=0)


def fc1d_reference(x, weights, biases, compute_dtype=jnp.float32):
    """Pure-JAX reference (eval-mode dropout) with selectable matmul dtype."""
    B, C, H, W = x.shape
    h = x.reshape(-1, FEAT)
    L = weights.shape[0]
    for l in range(L):
        y = jnp.dot(h.astype(compute_dtype), weights[l].astype(compute_dtype),
                    preferred_element_type=jnp.float32)
        y = y + biases[l]
        h = jnp.maximum(y, NEG_SLOPE * y) if l < L - 1 else y
    return h.reshape(B, C, H, W).astype(x.dtype)


if __name__ == "__main__":
    key = jax.random.PRNGKey(0)
    kx, kp = jax.random.split(key)

    # Small shapes consistent with the module: [B, in_chans=32, H, W=32].
    B, C, H, W = 2, 32, 4, 32
    num_blocks = 3
    # drop_prob only affects training mode; eval-mode dropout is identity.
    # TODO(synk): training-mode Dropout (stochastic masking via pltpu.prng_*)
    # is not implemented; this kernel matches module.eval() semantics.

    x = jax.random.normal(kx, (B, C, H, W), dtype=jnp.float32)
    weights, biases = init_params(kp, num_blocks)

    out = fc1d_forward(x, weights, biases)
    out = jax.block_until_ready(out)
    assert out.shape == (B, C, H, W)
    assert out.dtype == x.dtype

    # bf16-compute reference (same math as the kernel) -> tight tolerance;
    # f32 reference -> loose tolerance that bounds the bf16 quantization error.
    ref_bf16 = fc1d_reference(x, weights, biases, compute_dtype=jnp.bfloat16)
    ref_f32 = fc1d_reference(x, weights, biases, compute_dtype=jnp.float32)
    assert jnp.allclose(out, ref_bf16, atol=1e-2, rtol=1e-2), "mismatch vs bf16 ref"
    assert jnp.allclose(out, ref_f32, atol=5e-2, rtol=5e-2), "mismatch vs f32 ref"

    print("KERNEL_OK")
</pallas_src>

<mosaic_0001>
module attributes {stable_mosaic.version = 11 : i64} {
  func.func @fc1d_kernel(%arg0: i32, %arg1: memref<32x256xf32, #tpu.memory_space<vmem>>, %arg2: memref<3x256x256xbf16, #tpu.memory_space<vmem>>, %arg3: memref<3x256xf32, #tpu.memory_space<vmem>>, %arg4: memref<32x256xf32, #tpu.memory_space<vmem>>) attributes {dimension_semantics = [#tpu.dimension_semantics<parallel>], iteration_bounds = array<i64: 1>, scalar_prefetch = 0 : i64, scratch_operands = 0 : i64, tpu.core_type = #tpu.core_type<tc>, window_params = [{transform_indices = @transform_0, window_bounds = array<i64: 32, 256>}, {pipeline_mode = #tpu.pipeline_mode<synchronous>, transform_indices = @transform_1, window_bounds = array<i64: 3, 256, 256>}, {pipeline_mode = #tpu.pipeline_mode<synchronous>, transform_indices = @transform_2, window_bounds = array<i64: 3, 256>}, {transform_indices = @transform_3, window_bounds = array<i64: 32, 256>}]} {
    %c0 = arith.constant 0 : index
    %c0_0 = arith.constant 0 : index
    %0 = vector.load %arg3[%c0, %c0_0] : memref<3x256xf32, #tpu.memory_space<vmem>>, vector<3x256xf32>
    %c0_1 = arith.constant 0 : index
    %c0_2 = arith.constant 0 : index
    %1 = vector.load %arg1[%c0_1, %c0_2] : memref<32x256xf32, #tpu.memory_space<vmem>>, vector<32x256xf32>
    %2 = arith.truncf %1 : vector<32x256xf32> to vector<32x256xbf16>
    %c0_3 = arith.constant 0 : index
    %c0_4 = arith.constant 0 : index
    %c0_5 = arith.constant 0 : index
    %3 = vector.load %arg2[%c0_3, %c0_4, %c0_5] : memref<3x256x256xbf16, #tpu.memory_space<vmem>>, vector<1x256x256xbf16>
    %4 = vector.shape_cast %3 : vector<1x256x256xbf16> to vector<256x256xbf16>
    %cst = arith.constant dense<0.000000e+00> : vector<32x256xf32>
    %5 = tpu.matmul %2, %4, %cst {dimension_numbers = #tpu.dot_dimension_numbers<[1], [0], [0], [1], [0, 0, 1, 1], [], []>} : vector<32x256xbf16>, vector<256x256xbf16>, vector<32x256xf32> -> vector<32x256xf32>
    %6 = vector.extract_strided_slice %0 {offsets = [0, 0], sizes = [1, 256], strides = [1, 1]} : vector<3x256xf32> to vector<1x256xf32>
    %7 = vector.shape_cast %6 : vector<1x256xf32> to vector<256xf32>
    %8 = vector.shape_cast %7 : vector<256xf32> to vector<1x256xf32>
    %9 = vector.broadcast %8 : vector<1x256xf32> to vector<32x256xf32>
    %10 = arith.addf %5, %9 : vector<32x256xf32>
    %cst_6 = arith.constant 0.00999999977 : f32
    %11 = vector.broadcast %cst_6 : f32 to vector<32x256xf32>
    %12 = arith.mulf %11, %10 : vector<32x256xf32>
    %13 = arith.maximumf %10, %12 : vector<32x256xf32>
    %14 = arith.truncf %13 : vector<32x256xf32> to vector<32x256xbf16>
    %c1 = arith.constant 1 : index
    %c0_7 = arith.constant 0 : index
    %c0_8 = arith.constant 0 : index
    %15 = vector.load %arg2[%c1, %c0_7, %c0_8] : memref<3x256x256xbf16, #tpu.memory_space<vmem>>, vector<1x256x256xbf16>
    %16 = vector.shape_cast %15 : vector<1x256x256xbf16> to vector<256x256xbf16>
    %cst_9 = arith.constant dense<0.000000e+00> : vector<32x256xf32>
    %17 = tpu.matmul %14, %16, %cst_9 {dimension_numbers = #tpu.dot_dimension_numbers<[1], [0], [0], [1], [0, 0, 1, 1], [], []>} : vector<32x256xbf16>, vector<256x256xbf16>, vector<32x256xf32> -> vector<32x256xf32>
    %18 = vector.extract_strided_slice %0 {offsets = [1, 0], sizes = [1, 256], strides = [1, 1]} : vector<3x256xf32> to vector<1x256xf32>
    %19 = vector.shape_cast %18 : vector<1x256xf32> to vector<256xf32>
    %20 = vector.shape_cast %19 : vector<256xf32> to vector<1x256xf32>
    %21 = vector.broadcast %20 : vector<1x256xf32> to vector<32x256xf32>
    %22 = arith.addf %17, %21 : vector<32x256xf32>
    %cst_10 = arith.constant 0.00999999977 : f32
    %23 = vector.broadcast %cst_10 : f32 to vector<32x256xf32>
    %24 = arith.mulf %23, %22 : vector<32x256xf32>
    %25 = arith.maximumf %22, %24 : vector<32x256xf32>
    %26 = arith.truncf %25 : vector<32x256xf32> to vector<32x256xbf16>
    %c2 = arith.constant 2 : index
    %c0_11 = arith.constant 0 : index
    %c0_12 = arith.constant 0 : index
    %27 = vector.load %arg2[%c2, %c0_11, %c0_12] : memref<3x256x256xbf16, #tpu.memory_space<vmem>>, vector<1x256x256xbf16>
    %28 = vector.shape_cast %27 : vector<1x256x256xbf16> to vector<256x256xbf16>
    %cst_13 = arith.constant dense<0.000000e+00> : vector<32x256xf32>
    %29 = tpu.matmul %26, %28, %cst_13 {dimension_numbers = #tpu.dot_dimension_numbers<[1], [0], [0], [1], [0, 0, 1, 1], [], []>} : vector<32x256xbf16>, vector<256x256xbf16>, vector<32x256xf32> -> vector<32x256xf32>
    %30 = vector.extract_strided_slice %0 {offsets = [2, 0], sizes = [1, 256], strides = [1, 1]} : vector<3x256xf32> to vector<1x256xf32>
    %31 = vector.shape_cast %30 : vector<1x256xf32> to vector<256xf32>
    %32 = vector.shape_cast %31 : vector<256xf32> to vector<1x256xf32>
    %33 = vector.broadcast %32 : vector<1x256xf32> to vector<32x256xf32>
    %34 = arith.addf %29, %33 : vector<32x256xf32>
    %c0_14 = arith.constant 0 : index
    %c0_15 = arith.constant 0 : index
    %35 = vector.load %arg4[%c0_14, %c0_15] : memref<32x256xf32, #tpu.memory_space<vmem>>, vector<32x256xf32>
    tpu.vector_store %arg4[%c0_14, %c0_15], %34 {strides = array<i32>} : memref<32x256xf32, #tpu.memory_space<vmem>>, vector<32x256xf32>,
    return
  }
  func.func @transform_0(%arg0: i32) -> (i32, i32) {
    %c0_i32 = arith.constant 0 : i32
    %c0_i32_0 = arith.constant 0 : i32
    return %arg0, %c0_i32 : i32, i32
  }
  func.func @transform_1(%arg0: i32) -> (i32, i32, i32) {
    %c0_i32 = arith.constant 0 : i32
    %c0_i32_0 = arith.constant 0 : i32
    %c0_i32_1 = arith.constant 0 : i32
    %c0_i32_2 = arith.constant 0 : i32
    return %c0_i32, %c0_i32_0, %c0_i32_1 : i32, i32, i32
  }
  func.func @transform_2(%arg0: i32) -> (i32, i32) {
    %c0_i32 = arith.constant 0 : i32
    %c0_i32_0 = arith.constant 0 : i32
    %c0_i32_1 = arith.constant 0 : i32
    return %c0_i32, %c0_i32_0 : i32, i32
  }
  func.func @transform_3(%arg0: i32) -> (i32, i32) {
    %c0_i32 = arith.constant 0 : i32
    %c0_i32_0 = arith.constant 0 : i32
    return %arg0, %c0_i32 : i32, i32
  }
}

module attributes {stable_mosaic.version = 11 : i64} {
  func.func @fc1d_kernel(%arg0: i32, %arg1: memref<32x256xf32, #tpu.memory_space<vmem>>, %arg2: memref<3x256x256xbf16, #tpu.memory_space<vmem>>, %arg3: memref<3x256xf32, #tpu.memory_space<vmem>>, %arg4: memref<32x256xf32, #tpu.memory_space<vmem>>) attributes {dimension_semantics = [#tpu.dimension_semantics<parallel>], iteration_bounds = array<i64: 1>, scalar_prefetch = 0 : i64, scratch_operands = 0 : i64, tpu.core_type = #tpu.core_type<tc>, window_params = [{transform_indices = @transform_0, window_bounds = array<i64: 32, 256>}, {pipeline_mode = #tpu.pipeline_mode<synchronous>, transform_indices = @transform_1, window_bounds = array<i64: 3, 256, 256>}, {pipeline_mode = #tpu.pipeline_mode<synchronous>, transform_indices = @transform_2, window_bounds = array<i64: 3, 256>}, {transform_indices = @transform_3, window_bounds = array<i64: 32, 256>}]} {
    %c0 = arith.constant 0 : index
    %c0_0 = arith.constant 0 : index
    %0 = vector.load %arg3[%c0, %c0_0] : memref<3x256xf32, #tpu.memory_space<vmem>>, vector<3x256xf32>
    %c0_1 = arith.constant 0 : index
    %c0_2 = arith.constant 0 : index
    %1 = vector.load %arg1[%c0_1, %c0_2] : memref<32x256xf32, #tpu.memory_space<vmem>>, vector<32x256xf32>
    %2 = arith.truncf %1 : vector<32x256xf32> to vector<32x256xbf16>
    %c0_3 = arith.constant 0 : index
    %c0_4 = arith.constant 0 : index
    %c0_5 = arith.constant 0 : index
    %3 = vector.load %arg2[%c0_3, %c0_4, %c0_5] : memref<3x256x256xbf16, #tpu.memory_space<vmem>>, vector<1x256x256xbf16>
    %4 = vector.shape_cast %3 : vector<1x256x256xbf16> to vector<256x256xbf16>
    %cst = arith.constant dense<0.000000e+00> : vector<32x256xf32>
    %5 = tpu.matmul %2, %4, %cst {dimension_numbers = #tpu.dot_dimension_numbers<[1], [0], [0], [1], [0, 0, 1, 1], [], []>} : vector<32x256xbf16>, vector<256x256xbf16>, vector<32x256xf32> -> vector<32x256xf32>
    %6 = vector.extract_strided_slice %0 {offsets = [0, 0], sizes = [1, 256], strides = [1, 1]} : vector<3x256xf32> to vector<1x256xf32>
    %7 = vector.shape_cast %6 : vector<1x256xf32> to vector<256xf32>
    %8 = vector.shape_cast %7 : vector<256xf32> to vector<1x256xf32>
    %9 = vector.broadcast %8 : vector<1x256xf32> to vector<32x256xf32>
    %10 = arith.addf %5, %9 : vector<32x256xf32>
    %cst_6 = arith.constant 0.00999999977 : f32
    %11 = vector.broadcast %cst_6 : f32 to vector<32x256xf32>
    %12 = arith.mulf %11, %10 : vector<32x256xf32>
    %13 = arith.maximumf %10, %12 : vector<32x256xf32>
    %14 = arith.truncf %13 : vector<32x256xf32> to vector<32x256xbf16>
    %c1 = arith.constant 1 : index
    %c0_7 = arith.constant 0 : index
    %c0_8 = arith.constant 0 : index
    %15 = vector.load %arg2[%c1, %c0_7, %c0_8] : memref<3x256x256xbf16, #tpu.memory_space<vmem>>, vector<1x256x256xbf16>
    %16 = vector.shape_cast %15 : vector<1x256x256xbf16> to vector<256x256xbf16>
    %cst_9 = arith.constant dense<0.000000e+00> : vector<32x256xf32>
    %17 = tpu.matmul %14, %16, %cst_9 {dimension_numbers = #tpu.dot_dimension_numbers<[1], [0], [0], [1], [0, 0, 1, 1], [], []>} : vector<32x256xbf16>, vector<256x256xbf16>, vector<32x256xf32> -> vector<32x256xf32>
    %18 = vector.extract_strided_slice %0 {offsets = [1, 0], sizes = [1, 256], strides = [1, 1]} : vector<3x256xf32> to vector<1x256xf32>
    %19 = vector.shape_cast %18 : vector<1x256xf32> to vector<256xf32>
    %20 = vector.shape_cast %19 : vector<256xf32> to vector<1x256xf32>
    %21 = vector.broadcast %20 : vector<1x256xf32> to vector<32x256xf32>
    %22 = arith.addf %17, %21 : vector<32x256xf32>
    %cst_10 = arith.constant 0.00999999977 : f32
    %23 = vector.broadcast %cst_10 : f32 to vector<32x256xf32>
    %24 = arith.mulf %23, %22 : vector<32x256xf32>
    %25 = arith.maximumf %22, %24 : vector<32x256xf32>
    %26 = arith.truncf %25 : vector<32x256xf32> to vector<32x256xbf16>
    %c2 = arith.constant 2 : index
    %c0_11 = arith.constant 0 : index
    %c0_12 = arith.constant 0 : index
    %27 = vector.load %arg2[%c2, %c0_11, %c0_12] : memref<3x256x256xbf16, #tpu.memory_space<vmem>>, vector<1x256x256xbf16>
    %28 = vector.shape_cast %27 : vector<1x256x256xbf16> to vector<256x256xbf16>
    %cst_13 = arith.constant dense<0.000000e+00> : vector<32x256xf32>
    %29 = tpu.matmul %26, %28, %cst_13 {dimension_numbers = #tpu.dot_dimension_numbers<[1], [0], [0], [1], [0, 0, 1, 1], [], []>} : vector<32x256xbf16>, vector<256x256xbf16>, vector<32x256xf32> -> vector<32x256xf32>
    %30 = vector.extract_strided_slice %0 {offsets = [2, 0], sizes = [1, 256], strides = [1, 1]} : vector<3x256xf32> to vector<1x256xf32>
    %31 = vector.shape_cast %30 : vector<1x256xf32> to vector<256xf32>
    %32 = vector.shape_cast %31 : vector<256xf32> to vector<1x256xf32>
    %33 = vector.broadcast %32 : vector<1x256xf32> to vector<32x256xf32>
    %34 = arith.addf %29, %33 : vector<32x256xf32>
    %c0_14 = arith.constant 0 : index
    %c0_15 = arith.constant 0 : index
    %35 = vector.load %arg4[%c0_14, %c0_15] : memref<32x256xf32, #tpu.memory_space<vmem>>, vector<32x256xf32>
    tpu.vector_store %arg4[%c0_14, %c0_15], %34 {strides = array<i32>} : memref<32x256xf32, #tpu.memory_space<vmem>>, vector<32x256xf32>,
    return
  }
  func.func @transform_0(%arg0: i32) -> (i32, i32) {
    %c0_i32 = arith.constant 0 : i32
    %c0_i32_0 = arith.constant 0 : i32
    return %arg0, %c0_i32 : i32, i32
  }
  func.func @transform_1(%arg0: i32) -> (i32, i32, i32) {
    %c0_i32 = arith.constant 0 : i32
    %c0_i32_0 = arith.constant 0 : i32
    %c0_i32_1 = arith.constant 0 : i32
    %c0_i32_2 = arith.constant 0 : i32
    return %c0_i32, %c0_i32_0, %c0_i32_1 : i32, i32, i32
  }
  func.func @transform_2(%arg0: i32) -> (i32, i32) {
    %c0_i32 = arith.constant 0 : i32
    %c0_i32_0 = arith.constant 0 : i32
    %c0_i32_1 = arith.constant 0 : i32
    return %c0_i32, %c0_i32_0 : i32, i32
  }
  func.func @transform_3(%arg0: i32) -> (i32, i32) {
    %c0_i32 = arith.constant 0 : i32
    %c0_i32_0 = arith.constant 0 : i32
    return %arg0, %c0_i32 : i32, i32
  }
}

</mosaic_0001>

<bundles_post_ra>
// kernel: tpu_custom_call.1
= control target key start
LH: loop header
LB: loop body
LE: loop exit
PB: predicated region body
PF: predicated region fallthrough
CT: control target
= control target key end

     0   :  { %8 = vsyncpa [#allocation3], 0  ;;  %s1445_s0 = inlined_call_operand.hbm [shape: f32[32,256], index: 0, kind: input, shape index: {}]   ;;  %s1446_s1 = inlined_call_operand.hbm [shape: bf16[3,256,256], index: 1, kind: input, shape index: {}]   ;;  %s1447_s2 = inlined_call_operand.hbm [shape: f32[3,256], index: 2, kind: input, shape index: {}]   ;;  %s1448_s3 = inlined_call_operand.hbm [shape: f32[32,256], index: 3, kind: output, shape index: {}]  }
   0x1   :  { %9 = vsyncpa [#allocation6], 0 }
   0x2   :  { %10 = vsyncpa [#allocation4], 0  ;;  %s1291_s12 = smov [#allocation5]  }
   0x3   :  { %s28_s13 = sshll.u32 %s1291_s12, 4  ;;  %s29_s13 = int_to_ptr.vmem [resolvable:$true] %s28_s13 }
   0x4   :  { %s1213_s14 = scalar_lea.vmem %s29_s13, 12288  ;;  %p1218_p1 = scmp.lt.s32.totalorder %s29_s13, %s29_s13 }
   0x5   :  { %p1214_p0 = scmp.ne.s32.totalorder %s29_s13, %s1213_s14  ;;  %p1219_p2 = scmp.lt.s32.totalorder %s1213_s14, %s1213_s14 }
   0x7   :  { %p1220_p3 = por %p1219_p2, %p1218_p1 }
   0x9   :  { %p1221_p4 = pnand %p1220_p3, %p1214_p0 }
   0xb   :  { %1224 = shalt.err (!%p1221_p4)
}
   0xc   :  { %s1292_s15 = smov 128   ;;  %s1293_s16 = smov 8  }
   0xd   :  { %34 = dma.hbm_to_vmem [thread:$0]  %s1446_s1, 12288, %s29_s13, [#allocation6], %s1292_s15, %s1292_s15, %s1293_s16  }
   0xe   :  { %s1294_s19 = smov [#allocation2]  }
   0xf   :  { %s16_s20 = sshll.u32 %s1294_s19, 4  ;;  %s17_s20 = int_to_ptr.vmem [resolvable:$true] %s16_s20 }
  0x10   :  { %s1233_s21 = scalar_lea.vmem %s17_s20, 1024  ;;  %p1238_p6 = scmp.lt.s32.totalorder %s17_s20, %s17_s20 }
  0x11   :  { %p1234_p5 = scmp.ne.s32.totalorder %s17_s20, %s1233_s21  ;;  %p1239_p7 = scmp.lt.s32.totalorder %s1233_s21, %s1233_s21 }
  0x13   :  { %p1240_p8 = por %p1239_p7, %p1238_p6 }
  0x15   :  { %p1241_p9 = pnand %p1240_p8, %p1234_p5 }
  0x17   :  { %1244 = shalt.err (!%p1241_p9)
}
  0x18   :  { %s1295_s22 = smov 256   ;;  %s1296_s23 = smov 16  }
  0x19   :  { %22 = dma.hbm_to_vmem [thread:$0]  %s1445_s0, 1024, %s17_s20, [#allocation3], %s1295_s22, %s1295_s22, %s1296_s23  }
  0x1a   :  { %s1297_s1 = smov [#allocation7]  }
  0x1b   :  { %s41_s26 = sshll.u32 %s1297_s1, 4  ;;  %s42_s26 = int_to_ptr.vmem [resolvable:$true] %s41_s26 }
  0x1c   :  { %s1253_s27 = scalar_lea.vmem %s42_s26, 128  ;;  %p1258_p11 = scmp.lt.s32.totalorder %s42_s26, %s42_s26 }
  0x1d   :  { %p1254_p10 = scmp.ne.s32.totalorder %s42_s26, %s1253_s27  ;;  %p1259_p12 = scmp.lt.s32.totalorder %s1253_s27, %s1253_s27 }
  0x1f   :  { %p1260_p13 = por %p1259_p12, %p1258_p11 }
  0x21   :  { %p1261_p0 = pnand %p1260_p13, %p1254_p10 }
  0x23   :  { %1264 = shalt.err (!%p1261_p0)
}
  0x24   :  { %44 = dma.hbm_to_vmem [thread:$0]  %s1447_s2, 128, %s42_s26, [#allocation6]  }
  0x25   :  { %1285 = dma.done.wait [#allocation3], 1024  }
  0x26   :  { %1286 = vsyncadd [#allocation3], 4294966272 }
  0x27   :  { %1287 = dma.done.wait [#allocation6], 12416  }
  0x28   :  { %1288 = vsyncadd [#allocation6], 4294954880  ;;  %v1061_v0 = vld [vmem:[#allocation5 + $0x74] ss:$8 sps:$4 sm:$0xff]   ;;  %v1063_v1 = vld [vmem:[#allocation5 + $0x70] ss:$8 sps:$4 sm:$0xff]  }
  0x29   :  { %278 = vmatprep.subr.bf16.mxu0 %v1061_v0  ;;  %v1064_v2 = vld [vmem:[#allocation5 + $0x64] ss:$8 sps:$4 sm:$0xff]   ;;  %v1066_v3 = vld [vmem:[#allocation5 + $0x60] ss:$8 sps:$4 sm:$0xff]   ;;  %v1067_v4 = vld [vmem:[#allocation5 + $0x54] ss:$8 sps:$4 sm:$0xff]  }
  0x2a   :  { %279 = vmatpush1.bf16.msra.mxu0 %v1063_v1  ;;  %v1069_v5 = vld [vmem:[#allocation5 + $0x50] ss:$8 sps:$4 sm:$0xff]   ;;  %v1070_v6 = vld [vmem:[#allocation5 + $0x44] ss:$8 sps:$4 sm:$0xff]   ;;  %v1072_v7 = vld [vmem:[#allocation5 + $0x40] ss:$8 sps:$4 sm:$0xff]  }
  0x2b   :  { %280 = vmatprep.subr.bf16.mxu0 %v1064_v2  ;;  %v1073_v8 = vld [vmem:[#allocation5 + $0x34] ss:$8 sps:$4 sm:$0xff]   ;;  %v1075_v9 = vld [vmem:[#allocation5 + $0x30] ss:$8 sps:$4 sm:$0xff]   ;;  %v1076_v10 = vld [vmem:[#allocation5 + $0x24] ss:$8 sps:$4 sm:$0xff]  }
  0x2c   :  { %v1078_v11 = vld [vmem:[#allocation5 + $0x20] ss:$8 sps:$4 sm:$0xff]   ;;  %v1079_v12 = vld [vmem:[#allocation5 + $0x14] ss:$8 sps:$4 sm:$0xff]   ;;  %v1081_v16 = vld [vmem:[#allocation5 + $0x10] ss:$8 sps:$4 sm:$0xff]  }
  0x2d   :  { %v56_v13 = vld [vmem:[#allocation2 + $0x8] sm:$0xff]  ;;  %v58_v14 = vld [vmem:[#allocation2 + $0x18] sm:$0xff]  ;;  %v55_v54 = vld [vmem:[#allocation2] sm:$0xff]  ;;  %s1298_s0 = smov [#allocation8]  }
  0x2e   :  { %281 = vmatpush1.bf16.msra.mxu0 %v1066_v3  ;;  %v64_v15 = vpack.c.bf16 %v58_v14, %v56_v13  ;;  %v1082_v17 = vld [vmem:[#allocation5 + $0x4] ss:$8 sps:$4 sm:$0xff]   ;;  %v1109_v18 = vld [vmem:[#allocation5 + $0x174] ss:$8 sps:$4 sm:$0xff]   ;;  %v1111_v19 = vld [vmem:[#allocation5 + $0x170] ss:$8 sps:$4 sm:$0xff]  }
  0x2f   :  { %282 = vmatprep.subr.bf16.mxu0 %v1067_v4  ;;  %v1084_v20 = vld [vmem:[#allocation5] ss:$8 sps:$4 sm:$0xff]   ;;  %562 = vmatprep.subr.bf16.mxu1 %v1109_v18  ;;  %v1112_v21 = vld [vmem:[#allocation5 + $0x164] ss:$8 sps:$4 sm:$0xff]   ;;  %v1085_v22 = vld [vmem:[#allocation5 + $0xf4] ss:$8 sps:$4 sm:$0xff]  }
  0x30   :  { %310 = vmatprep.mubr.bf16.mxu0 %v64_v15  ;;  %563 = vmatpush1.bf16.msra.mxu1 %v1111_v19  ;;  %v1114_v23 = vld [vmem:[#allocation5 + $0x160] ss:$8 sps:$4 sm:$0xff]   ;;  %v1115_v24 = vld [vmem:[#allocation5 + $0x154] ss:$8 sps:$4 sm:$0xff]   ;;  %v1087_v25 = vld [vmem:[#allocation5 + $0xf0] ss:$8 sps:$4 sm:$0xff]  }
  0x31   :  { %564 = vmatprep.subr.bf16.mxu1 %v1112_v21  ;;  %v1088_v26 = vld [vmem:[#allocation5 + $0xe4] ss:$8 sps:$4 sm:$0xff]   ;;  %v1117_v27 = vld [vmem:[#allocation5 + $0x150] ss:$8 sps:$4 sm:$0xff]   ;;  %v1090_v29 = vld [vmem:[#allocation5 + $0xe0] ss:$8 sps:$4 sm:$0xff]  }
  0x32   :  { %283 = vmatpush1.bf16.msra.mxu0 %v1069_v5  ;;  %v1118_v28 = vld [vmem:[#allocation5 + $0x144] ss:$8 sps:$4 sm:$0xff]   ;;  %v1091_v30 = vld [vmem:[#allocation5 + $0xd4] ss:$8 sps:$4 sm:$0xff]   ;;  %v1120_v31 = vld [vmem:[#allocation5 + $0x140] ss:$8 sps:$4 sm:$0xff]  }
  0x33   :  { %284 = vmatprep.subr.bf16.mxu0 %v1070_v6  ;;  %v1121_v32 = vld [vmem:[#allocation5 + $0x134] ss:$8 sps:$4 sm:$0xff]   ;;  %v1093_v33 = vld [vmem:[#allocation5 + $0xd0] ss:$8 sps:$4 sm:$0xff]   ;;  %v1094_v34 = vld [vmem:[#allocation5 + $0xc4] ss:$8 sps:$4 sm:$0xff]  }
  0x34   :  { %565 = vmatpush1.bf16.msra.mxu1 %v1114_v23  ;;  %v1123_v35 = vld [vmem:[#allocation5 + $0x130] ss:$8 sps:$4 sm:$0xff]   ;;  %v1124_v36 = vld [vmem:[#allocation5 + $0x124] ss:$8 sps:$4 sm:$0xff]   ;;  %v1096_v37 = vld [vmem:[#allocation5 + $0xc0] ss:$8 sps:$4 sm:$0xff]  }
  0x35   :  { %566 = vmatprep.subr.bf16.mxu1 %v1115_v24  ;;  %v1126_v38 = vld [vmem:[#allocation5 + $0x120] ss:$8 sps:$4 sm:$0xff]   ;;  %v1097_v39 = vld [vmem:[#allocation5 + $0xb4] ss:$8 sps:$4 sm:$0xff]   ;;  %v1099_v41 = vld [vmem:[#allocation5 + $0xb0] ss:$8 sps:$4 sm:$0xff]  }
  0x36   :  { %285 = vmatpush1.bf16.msra.mxu0 %v1072_v7  ;;  %v1127_v40 = vld [vmem:[#allocation5 + $0x114] ss:$8 sps:$4 sm:$0xff]   ;;  %v1129_v42 = vld [vmem:[#allocation5 + $0x110] ss:$8 sps:$4 sm:$0xff]   ;;  %v1100_v43 = vld [vmem:[#allocation5 + $0xa4] ss:$8 sps:$4 sm:$0xff]  }
  0x37   :  { %286 = vmatprep.subr.bf16.mxu0 %v1073_v8  ;;  %v1130_v44 = vld [vmem:[#allocation5 + $0x104] ss:$8 sps:$4 sm:$0xff]   ;;  %v1102_v45 = vld [vmem:[#allocation5 + $0xa0] ss:$8 sps:$4 sm:$0xff]   ;;  %v1103_v47 = vld [vmem:[#allocation5 + $0x94] ss:$8 sps:$4 sm:$0xff]  }
  0x38   :  { %567 = vmatpush1.bf16.msra.mxu1 %v1117_v27  ;;  %v1132_v46 = vld [vmem:[#allocation5 + $0x100] ss:$8 sps:$4 sm:$0xff]   ;;  %v1133_v48 = vld [vmem:[#allocation5 + $0x1f4] ss:$8 sps:$4 sm:$0xff]   ;;  %v1105_v49 = vld [vmem:[#allocation5 + $0x90] ss:$8 sps:$4 sm:$0xff]  }
  0x39   :  { %568 = vmatprep.subr.bf16.mxu1 %v1118_v28  ;;  %v1135_v50 = vld [vmem:[#allocation5 + $0x1f0] ss:$8 sps:$4 sm:$0xff]   ;;  %v1106_v51 = vld [vmem:[#allocation5 + $0x84] ss:$8 sps:$4 sm:$0xff]   ;;  %v1108_v53 = vld [vmem:[#allocation5 + $0x80] ss:$8 sps:$4 sm:$0xff]  }
  0x3a   :  { %287 = vmatpush1.bf16.msra.mxu0 %v1075_v9  ;;  %v1136_v52 = vld [vmem:[#allocation5 + $0x1e4] ss:$8 sps:$4 sm:$0xff]   ;;  %v57_v55 = vld [vmem:[#allocation2 + $0x10] sm:$0xff]  ;;  %v1138_v56 = vld [vmem:[#allocation5 + $0x1e0] ss:$8 sps:$4 sm:$0xff]   ;;  %s912_s2 = sshll.u32 %s1298_s0, 4  ;;  %s913_s2 = int_to_ptr.vmem [resolvable:$true] %s912_s2 }
  0x3b   :  { %288 = vmatprep.subr.bf16.mxu0 %v1076_v10  ;;  %v60_v57 = vld [vmem:[#allocation2 + $0x28] sm:$0xff]  ;;  %v62_v58 = vld [vmem:[#allocation2 + $0x38] sm:$0xff]  ;;  %v63_v60 = vpack.c.bf16 %v57_v55, %v55_v54  ;;  %v59_v0 = vld [vmem:[#allocation2 + $0x20] sm:$0xff]  ;;  %s1265_s30 = scalar_lea.vmem %s913_s2, 1024  ;;  %p1270_p2 = scmp.lt.s32.totalorder %s913_s2, %s913_s2 }
  0x3c   :  { %569 = vmatpush1.bf16.msra.mxu1 %v1120_v31  ;;  %v1139_v59 = vld [vmem:[#allocation5 + $0x1d4] ss:$8 sps:$4 sm:$0xff]   ;;  %v66_v61 = vpack.c.bf16 %v62_v58, %v60_v57  ;;  %v1141_v62 = vld [vmem:[#allocation5 + $0x1d0] ss:$8 sps:$4 sm:$0xff]   ;;  %v1142_v63 = vld [vmem:[#allocation5 + $0x1c4] ss:$8 sps:$4 sm:$0xff]   ;;  %p1266_p1 = scmp.ne.s32.totalorder %s913_s2, %s1265_s30  ;;  %p1271_p3 = scmp.lt.s32.totalorder %s1265_s30, %s1265_s30 }
  0x3d   :  { %570 = vmatprep.subr.bf16.mxu1 %v1121_v32  ;;  %v61_v1 = vld [vmem:[#allocation2 + $0x30] sm:$0xff]  ;;  %v1144_v2 = vld [vmem:[#allocation5 + $0x1c0] ss:$8 sps:$4 sm:$0xff]   ;;  %v1148_v6 = vld [vmem:[#allocation5 + $0x1a4] ss:$8 sps:$4 sm:$0xff]  }
  0x3e   :  { %289 = vmatpush1.bf16.msra.mxu0 %v1078_v11  ;;  %v65_v3 = vpack.c.bf16 %v61_v1, %v59_v0  ;;  %v1145_v4 = vld [vmem:[#allocation5 + $0x1b4] ss:$8 sps:$4 sm:$0xff]   ;;  %v1147_v5 = vld [vmem:[#allocation5 + $0x1b0] ss:$8 sps:$4 sm:$0xff]   ;;  %v1150_v7 = vld [vmem:[#allocation5 + $0x1a0] ss:$8 sps:$4 sm:$0xff]   ;;  %p1272_p4 = por %p1271_p3, %p1270_p2 }
  0x3f   :  { %290 = vmatprep.subr.bf16.mxu0 %v1079_v12  ;;  %v1151_v8 = vld [vmem:[#allocation5 + $0x194] ss:$8 sps:$4 sm:$0xff]   ;;  %v1153_v9 = vld [vmem:[#allocation5 + $0x190] ss:$8 sps:$4 sm:$0xff]   ;;  %v1154_v10 = vld [vmem:[#allocation5 + $0x184] ss:$8 sps:$4 sm:$0xff]  }
  0x40   :  { %571 = vmatpush1.bf16.msra.mxu1 %v1123_v35  ;;  %v1156_v11 = vld [vmem:[#allocation5 + $0x180] ss:$8 sps:$4 sm:$0xff]   ;;  %v1331_v12 = vld [vmem:[#allocation5 + $0x270] ss:$8 sps:$4 sm:$0xff]   ;;  %v1159_v13 = vld [vmem:[#allocation5 + $0x274] ss:$8 sps:$4 sm:$0xff]   ;;  %p1273_p5 = pnand %p1272_p4, %p1266_p1 }
  0x41   :  { %572 = vmatprep.subr.bf16.mxu1 %v1124_v36  ;;  %v1333_v14 = vld [vmem:[#allocation5 + $0x264] ss:$8 sps:$4 sm:$0xff]   ;;  %v1336_v15 = vld [vmem:[#allocation5 + $0x260] ss:$8 sps:$4 sm:$0xff]   ;;  %v1354_v21 = vld [vmem:[#allocation5 + $0x230] ss:$8 sps:$4 sm:$0xff]   ;;  %v100_v36 = vlaneseq }
  0x42   :  { %291 = vmatpush1.bf16.msra.mxu0 %v1081_v16  ;;  %v1339_v16 = vld [vmem:[#allocation5 + $0x254] ss:$8 sps:$4 sm:$0xff]   ;;  %v1345_v18 = vld [vmem:[#allocation5 + $0x244] ss:$8 sps:$4 sm:$0xff]   ;;  %v1348_v19 = vld [vmem:[#allocation5 + $0x240] ss:$8 sps:$4 sm:$0xff]  }
  0x43   :  { %292 = vmatprep.subr.bf16.mxu0 %v1082_v17  ;;  %v1342_v17 = vld [vmem:[#allocation5 + $0x250] ss:$8 sps:$4 sm:$0xff]   ;;  %v1360_v23 = vld [vmem:[#allocation5 + $0x220] ss:$8 sps:$4 sm:$0xff]   ;;  %v1363_v24 = vld [vmem:[#allocation5 + $0x214] ss:$8 sps:$4 sm:$0xff]  }
  0x44   :  { %573 = vmatpush1.bf16.msra.mxu1 %v1126_v38  ;;  %v1372_v27 = vld [vmem:[#allocation5 + $0x200] ss:$8 sps:$4 sm:$0xff]   ;;  %v1375_v28 = vld [vmem:[#allocation5 + $0x2f4] ss:$8 sps:$4 sm:$0xff]  }
  0x45   :  { %574 = vmatprep.subr.bf16.mxu1 %v1127_v40  ;;  %v1384_v31 = vld [vmem:[#allocation5 + $0x2e0] ss:$8 sps:$4 sm:$0xff]   ;;  %v1387_v32 = vld [vmem:[#allocation5 + $0x2d4] ss:$8 sps:$4 sm:$0xff]  }
  0x46   :  { %293 = vmatpush1.bf16.msra.mxu0 %v1084_v20  ;;  %v1351_v20 = vld [vmem:[#allocation5 + $0x234] ss:$8 sps:$4 sm:$0xff]   ;;  %v1396_v35 = vld [vmem:[#allocation5 + $0x2c0] ss:$8 sps:$4 sm:$0xff]  }
  0x47   :  { %294 = vmatprep.subr.bf16.mxu0 %v1085_v22  ;;  %v1357_v22 = vld [vmem:[#allocation5 + $0x224] ss:$8 sps:$4 sm:$0xff]  }
  0x48   :  { %575 = vmatpush1.bf16.msra.mxu1 %v1129_v42  ;;  %v1404_v40 = vld [vmem:[#allocation7] sm:$0x77] }
  0x49   :  { %576 = vmatprep.subr.bf16.mxu1 %v1130_v44 }
  0x4a   :  { %295 = vmatpush2.bf16.msra.mxu0 %v1087_v25  ;;  %v1366_v25 = vld [vmem:[#allocation5 + $0x210] ss:$8 sps:$4 sm:$0xff]  }
  0x4b   :  { %296 = vmatprep.subr.bf16.mxu0 %v1088_v26  ;;  %v1369_v26 = vld [vmem:[#allocation5 + $0x204] ss:$8 sps:$4 sm:$0xff]  }
  0x4c   :  { %577 = vmatpush1.bf16.msra.mxu1 %v1132_v46 }
  0x4d   :  { %578 = vmatprep.subr.bf16.mxu1 %v1133_v48 }
  0x4e   :  { %297 = vmatpush2.bf16.msra.mxu0 %v1090_v29  ;;  %v1378_v29 = vld [vmem:[#allocation5 + $0x2f0] ss:$8 sps:$4 sm:$0xff]  }
  0x4f   :  { %298 = vmatprep.subr.bf16.mxu0 %v1091_v30  ;;  %v1381_v30 = vld [vmem:[#allocation5 + $0x2e4] ss:$8 sps:$4 sm:$0xff]  }
  0x50   :  { %579 = vmatpush2.bf16.msra.mxu1 %v1135_v50 }
  0x51   :  { %580 = vmatprep.subr.bf16.mxu1 %v1136_v52 }
  0x52   :  { %299 = vmatpush2.bf16.msra.mxu0 %v1093_v33  ;;  %v1390_v33 = vld [vmem:[#allocation5 + $0x2d0] ss:$8 sps:$4 sm:$0xff]  }
  0x53   :  { %300 = vmatprep.subr.bf16.mxu0 %v1094_v34  ;;  %v1393_v34 = vld [vmem:[#allocation5 + $0x2c4] ss:$8 sps:$4 sm:$0xff]  }
  0x54   :  { %581 = vmatpush2.bf16.msra.mxu1 %v1138_v56 }
  0x55   :  { %582 = vmatprep.subr.bf16.mxu1 %v1139_v59 }
  0x56   :  { %301 = vmatpush2.bf16.msra.mxu0 %v1096_v37  ;;  %v1400_v37 = vshrl.u32 %v100_v36, 7 }
  0x57   :  { %302 = vmatprep.subr.bf16.mxu0 %v1097_v39 }
  0x58   :  { %583 = vmatpush2.bf16.msra.mxu1 %v1141_v62  ;;  %v106_v38 = vsub.s32 4, %v1400_v37  ;;  %v102_v39 = vsub.s32 0, %v1400_v37 }
  0x59   :  { %584 = vmatprep.subr.bf16.mxu1 %v1142_v63 }
  0x5a   :  { %303 = vmatpush2.bf16.msra.mxu0 %v1099_v41  ;;  %v107_v41 = vrot.slane %v1404_v40, %v106_v38  ;;  %v103_v42 = vrot.slane %v1404_v40, %v102_v39 }
  0x5b   :  { %304 = vmatprep.subr.bf16.mxu0 %v1100_v43 }
  0x5c   :  { %585 = vmatpush2.bf16.msra.mxu1 %v1144_v2  ;;  %v117_v43 = vrot.slane %v107_v41, %v102_v39  ;;  %v113_v44 = vrot.slane %v103_v42, %v102_v39 }
  0x5d   :  { %586 = vmatprep.subr.bf16.mxu1 %v1145_v4 }
  0x5e   :  { %305 = vmatpush2.bf16.msra.mxu0 %v1102_v45 }
  0x5f   :  { %306 = vmatprep.subr.bf16.mxu0 %v1103_v47 }
  0x60   :  { %587 = vmatpush2.bf16.msra.mxu1 %v1147_v5 }
  0x61   :  { %588 = vmatprep.subr.bf16.mxu1 %v1148_v6 }
  0x62   :  { %307 = vmatpush2.bf16.msra.mxu0 %v1105_v49 }
  0x63   :  { %308 = vmatprep.subr.bf16.mxu0 %v1106_v51 }
  0x64   :  { %589 = vmatpush2.bf16.msra.mxu1 %v1150_v7 }
  0x65   :  { %590 = vmatprep.subr.bf16.mxu1 %v1151_v8 }
  0x66   :  { %309 = vmatpush2.bf16.msra.mxu0 %v1108_v53 }
  0x67   :  { %846 = vmatprep.subr.bf16.mxu0 %v1159_v13 }
  0x68   :  { %591 = vmatpush2.bf16.msra.mxu1 %v1153_v9 }
  0x69   :  { %311 = vmatmul.mubr.bf16.vlgmr.msra.gmra.mxu0 %v63_v60  ;;  %592 = vmatprep.subr.bf16.mxu1 %v1154_v10 }
  0x6a   :  { %320 = vmatprep.mubr.bf16.mxu0 %v66_v61  ;;  %847 = vmatpush1.bf16.msra.mxu0 %v1331_v12 }
  0x6b   :  { %848 = vmatprep.subr.bf16.mxu0 %v1333_v14 }
  0x6c   :  { %593 = vmatpush2.bf16.msra.mxu1 %v1156_v11 }
  0x6d   :  { %1021 = vmatprep.subr.bf16.mxu1 %v1159_v13 }
  0x6e   :  { %849 = vmatpush1.bf16.msra.mxu0 %v1336_v15 }
  0x6f   :  { %850 = vmatprep.subr.bf16.mxu0 %v1339_v16 }
  0x71   :  { %321 = vmatmul.mubr.bf16.gmra.mxu0 %v65_v3 }
  0x72   :  { %851 = vmatpush1.bf16.msra.mxu0 %v1342_v17 }
  0x73   :  { %852 = vmatprep.subr.bf16.mxu0 %v1345_v18 }
  0x76   :  { %853 = vmatpush1.bf16.msra.mxu0 %v1348_v19 }
  0x77   :  { %854 = vmatprep.subr.bf16.mxu0 %v1351_v20 }
  0x7a   :  { %855 = vmatpush1.bf16.msra.mxu0 %v1354_v21 }
  0x7b   :  { %856 = vmatprep.subr.bf16.mxu0 %v1357_v22 }
  0x7e   :  { %857 = vmatpush1.bf16.msra.mxu0 %v1360_v23 }
  0x7f   :  { %858 = vmatprep.subr.bf16.mxu0 %v1363_v24 }
  0x82   :  { %859 = vmatpush1.bf16.msra.mxu0 %v1366_v25 }
  0x83   :  { %860 = vmatprep.subr.bf16.mxu0 %v1369_v26 }
  0x86   :  { %861 = vmatpush1.bf16.msra.mxu0 %v1372_v27 }
  0x87   :  { %862 = vmatprep.subr.bf16.mxu0 %v1375_v28 }
  0x8a   :  { %863 = vmatpush2.bf16.msra.mxu0 %v1378_v29 }
  0x8b   :  { %864 = vmatprep.subr.bf16.mxu0 %v1381_v30 }
  0x8e   :  { %865 = vmatpush2.bf16.msra.mxu0 %v1384_v31 }
  0x8f   :  { %866 = vmatprep.subr.bf16.mxu0 %v1387_v32 }
  0x92   :  { %867 = vmatpush2.bf16.msra.mxu0 %v1390_v33 }
  0x93   :  { %868 = vmatprep.subr.bf16.mxu0 %v1393_v34 }
  0x96   :  { %869 = vmatpush2.bf16.msra.mxu0 %v1396_v35 }
 0x129   :  { %v312_v45 = vpop.f32.mrf.mxu0 }
 0x12a   :  { %v313_v48 = vadd.f32 %v312_v45, %v113_v44 }
 0x12b   :  { %v314_v46 = vpop.f32.mrf.mxu0 }
 0x12c   :  { %v315_v47 = vadd.f32 %v314_v46, %v117_v43  ;;  %v331_v55 = vmul.f32 0.01, %v313_v48 }
 0x12d   :  { %v316_v49 = vpop.f32.mrf.mxu0 }
 0x12e   :  { %v317_v50 = vadd.f32 %v316_v49, %v113_v44  ;;  %v332_v52 = vmul.f32 0.01, %v315_v47  ;;  %v339_v63 = vmax.f32 %v313_v48, %v331_v55 }
 0x12f   :  { %v318_v51 = vpop.f32.mrf.mxu0 }
 0x130   :  { %v333_v53 = vmul.f32 0.01, %v317_v50  ;;  %v319_v54 = vadd.f32 %v318_v51, %v117_v43  ;;  %v340_v61 = vmax.f32 %v315_v47, %v332_v52 }
 0x131   :  { %v322_v56 = vpop.f32.mrf.mxu0 }
 0x132   :  { %v334_v57 = vmul.f32 0.01, %v319_v54  ;;  %v341_v58 = vmax.f32 %v317_v50, %v333_v53  ;;  %v323_v0 = vadd.f32 %v322_v56, %v113_v44 }
 0x133   :  { %v324_v59 = vpop.f32.mrf.mxu0 }
 0x134   :  { %v325_v60 = vadd.f32 %v324_v59, %v117_v43  ;;  %v342_v62 = vmax.f32 %v319_v54, %v334_v57  ;;  %v347_v5 = vpack.c.bf16 %v341_v58, %v339_v63  ;;  %v335_v9 = vmul.f32 0.01, %v323_v0 }
 0x135   :  { %v326_v1 = vpop.f32.mrf.mxu0 }
 0x136   :  { %v327_v2 = vadd.f32 %v326_v1, %v113_v44  ;;  %v348_v3 = vpack.c.bf16 %v342_v62, %v340_v61  ;;  %v336_v6 = vmul.f32 0.01, %v325_v60  ;;  %v343_v38 = vmax.f32 %v323_v0, %v335_v9 }
 0x137   :  { %v328_v4 = vpop.f32.mrf.mxu0 }
 0x138   :  { %v337_v7 = vmul.f32 0.01, %v327_v2  ;;  %v329_v8 = vadd.f32 %v328_v4, %v117_v43  ;;  %594 = vmatprep.mubr.bf16.mxu1 %v348_v3  ;;  %v344_v13 = vmax.f32 %v325_v60, %v336_v6  ;;  %v674_v6 = vsub.s32 6, %v1400_v37 }
 0x139   :  { %595 = vmatmul.mubr.bf16.vlgmr.msra.gmra.mxu1 %v347_v5  ;;  %v670_v5 = vsub.s32 2, %v1400_v37 }
 0x13a   :  { %v338_v10 = vmul.f32 0.01, %v329_v8  ;;  %1037 = vmatpush1.bf16.msra.mxu1 %v1331_v12  ;;  %v345_v11 = vmax.f32 %v327_v2, %v337_v7  ;;  %v1195_v12 = vld [vmem:[#allocation5 + $0x2b4] ss:$8 sps:$4 sm:$0xff]  }
 0x13b   :  { %1022 = vmatprep.subr.bf16.mxu1 %v1333_v14  ;;  %v1193_v14 = vld [vmem:[#allocation5 + $0x2b0] ss:$8 sps:$4 sm:$0xff]   ;;  %870 = vmatprep.subr.bf16.mxu0 %v1195_v12  ;;  %v671_v7 = vrot.slane %v1404_v40, %v670_v5 }
 0x13c   :  { %v346_v36 = vmax.f32 %v329_v8, %v338_v10  ;;  %v349_v41 = vpack.c.bf16 %v345_v11, %v343_v38  ;;  %871 = vmatpush2.bf16.msra.mxu0 %v1193_v14  ;;  %v675_v8 = vrot.slane %v1404_v40, %v674_v6 }
 0x13d   :  { %v681_v9 = vrot.slane %v671_v7, %v670_v5 }
 0x13e   :  { %v350_v39 = vpack.c.bf16 %v346_v36, %v344_v13  ;;  %1038 = vmatpush1.bf16.msra.mxu1 %v1336_v15  ;;  %v1198_v15 = vld [vmem:[#allocation5 + $0x2a4] ss:$8 sps:$4 sm:$0xff]   ;;  %v685_v10 = vrot.slane %v675_v8, %v670_v5 }
 0x13f   :  { %1023 = vmatprep.subr.bf16.mxu1 %v1339_v16  ;;  %v1196_v16 = vld [vmem:[#allocation5 + $0x2a0] ss:$8 sps:$4 sm:$0xff]   ;;  %872 = vmatprep.subr.bf16.mxu0 %v1198_v15 }
 0x140   :  { %604 = vmatprep.mubr.bf16.mxu1 %v350_v39  ;;  %873 = vmatpush2.bf16.msra.mxu0 %v1196_v16 }
 0x141   :  { %605 = vmatmul.mubr.bf16.gmra.mxu1 %v349_v41 }
 0x142   :  { %1039 = vmatpush1.bf16.msra.mxu1 %v1342_v17  ;;  %v1201_v17 = vld [vmem:[#allocation5 + $0x294] ss:$8 sps:$4 sm:$0xff]  }
 0x143   :  { %1024 = vmatprep.subr.bf16.mxu1 %v1345_v18  ;;  %v1199_v18 = vld [vmem:[#allocation5 + $0x290] ss:$8 sps:$4 sm:$0xff]   ;;  %874 = vmatprep.subr.bf16.mxu0 %v1201_v17 }
 0x144   :  { %875 = vmatpush2.bf16.msra.mxu0 %v1199_v18 }
 0x146   :  { %1040 = vmatpush1.bf16.msra.mxu1 %v1348_v19  ;;  %v1204_v19 = vld [vmem:[#allocation5 + $0x284] ss:$8 sps:$4 sm:$0xff]  }
 0x147   :  { %1025 = vmatprep.subr.bf16.mxu1 %v1351_v20  ;;  %v1202_v20 = vld [vmem:[#allocation5 + $0x280] ss:$8 sps:$4 sm:$0xff]   ;;  %876 = vmatprep.subr.bf16.mxu0 %v1204_v19 }
 0x148   :  { %877 = vmatpush2.bf16.msra.mxu0 %v1202_v20 }
 0x14a   :  { %1041 = vmatpush1.bf16.msra.mxu1 %v1354_v21  ;;  %v390_v21 = vsub.s32 5, %v1400_v37 }
 0x14b   :  { %1026 = vmatprep.subr.bf16.mxu1 %v1357_v22  ;;  %v386_v22 = vsub.s32 1, %v1400_v37 }
 0x14e   :  { %1042 = vmatpush1.bf16.msra.mxu1 %v1360_v23  ;;  %v391_v23 = vrot.slane %v1404_v40, %v390_v21 }
 0x14f   :  { %1027 = vmatprep.subr.bf16.mxu1 %v1363_v24  ;;  %v387_v24 = vrot.slane %v1404_v40, %v386_v22 }
 0x152   :  { %1043 = vmatpush1.bf16.msra.mxu1 %v1366_v25  ;;  %v401_v25 = vrot.slane %v391_v23, %v386_v22 }
 0x153   :  { %1028 = vmatprep.subr.bf16.mxu1 %v1369_v26  ;;  %v397_v26 = vrot.slane %v387_v24, %v386_v22 }
 0x156   :  { %1044 = vmatpush1.bf16.msra.mxu1 %v1372_v27 }
 0x157   :  { %1029 = vmatprep.subr.bf16.mxu1 %v1375_v28 }
 0x15a   :  { %1045 = vmatpush2.bf16.msra.mxu1 %v1378_v29 }
 0x15b   :  { %1030 = vmatprep.subr.bf16.mxu1 %v1381_v30 }
 0x15e   :  { %1046 = vmatpush2.bf16.msra.mxu1 %v1384_v31 }
 0x15f   :  { %1031 = vmatprep.subr.bf16.mxu1 %v1387_v32 }
 0x162   :  { %1047 = vmatpush2.bf16.msra.mxu1 %v1390_v33 }
 0x163   :  { %1032 = vmatprep.subr.bf16.mxu1 %v1393_v34 }
 0x166   :  { %1048 = vmatpush2.bf16.msra.mxu1 %v1396_v35 }
 0x167   :  { %1033 = vmatprep.subr.bf16.mxu1 %v1195_v12 }
 0x16a   :  { %1049 = vmatpush2.bf16.msra.mxu1 %v1193_v14 }
 0x16b   :  { %1034 = vmatprep.subr.bf16.mxu1 %v1198_v15 }
 0x16e   :  { %1050 = vmatpush2.bf16.msra.mxu1 %v1196_v16 }
 0x16f   :  { %1035 = vmatprep.subr.bf16.mxu1 %v1201_v17 }
 0x172   :  { %1051 = vmatpush2.bf16.msra.mxu1 %v1199_v18 }
 0x173   :  { %1036 = vmatprep.subr.bf16.mxu1 %v1204_v19 }
 0x176   :  { %1052 = vmatpush2.bf16.msra.mxu1 %v1202_v20 }
 0x1f9   :  { %v596_v27 = vpop.f32.mrf.mxu1 }
 0x1fa   :  { %v597_v30 = vadd.f32 %v596_v27, %v397_v26 }
 0x1fb   :  { %v598_v28 = vpop.f32.mrf.mxu1 }
 0x1fc   :  { %v599_v29 = vadd.f32 %v598_v28, %v401_v25  ;;  %v615_v43 = vmul.f32 0.01, %v597_v30 }
 0x1fd   :  { %v600_v31 = vpop.f32.mrf.mxu1 }
 0x1fe   :  { %v601_v32 = vadd.f32 %v600_v31, %v397_v26  ;;  %v616_v34 = vmul.f32 0.01, %v599_v29  ;;  %v623_v51 = vmax.f32 %v597_v30, %v615_v43 }
 0x1ff   :  { %v602_v33 = vpop.f32.mrf.mxu1 }
 0x200   :  { %v617_v35 = vmul.f32 0.01, %v601_v32  ;;  %v603_v42 = vadd.f32 %v602_v33, %v401_v25  ;;  %v624_v48 = vmax.f32 %v599_v29, %v616_v34 }
 0x201   :  { %v606_v44 = vpop.f32.mrf.mxu1 }
 0x202   :  { %v618_v45 = vmul.f32 0.01, %v603_v42  ;;  %v625_v46 = vmax.f32 %v601_v32, %v617_v35  ;;  %v607_v52 = vadd.f32 %v606_v44, %v397_v26 }
 0x203   :  { %v608_v47 = vpop.f32.mrf.mxu1 }
 0x204   :  { %v626_v49 = vmax.f32 %v603_v42, %v618_v45  ;;  %v609_v50 = vadd.f32 %v608_v47, %v401_v25  ;;  %v631_v56 = vpack.c.bf16 %v625_v46, %v623_v51  ;;  %v619_v61 = vmul.f32 0.01, %v607_v52 }
 0x205   :  { %v610_v53 = vpop.f32.mrf.mxu1 }
 0x206   :  { %v611_v54 = vadd.f32 %v610_v53, %v397_v26  ;;  %v632_v55 = vpack.c.bf16 %v626_v49, %v624_v48  ;;  %v620_v58 = vmul.f32 0.01, %v609_v50  ;;  %v627_v2 = vmax.f32 %v607_v52, %v619_v61 }
 0x207   :  { %v612_v57 = vpop.f32.mrf.mxu1 }
 0x208   :  { %v621_v59 = vmul.f32 0.01, %v611_v54  ;;  %v613_v60 = vadd.f32 %v612_v57, %v401_v25  ;;  %878 = vmatprep.mubr.bf16.mxu0 %v632_v55  ;;  %v628_v0 = vmax.f32 %v609_v50, %v620_v58 }
 0x209   :  { %879 = vmatmul.mubr.bf16.vlgmr.msra.gmra.mxu0 %v631_v56 }
 0x20a   :  { %v622_v62 = vmul.f32 0.01, %v613_v60  ;;  %v629_v63 = vmax.f32 %v611_v54, %v621_v59 }
 0x20c   :  { %v630_v1 = vmax.f32 %v613_v60, %v622_v62  ;;  %v633_v4 = vpack.c.bf16 %v629_v63, %v627_v2 }
 0x20e   :  { %v634_v3 = vpack.c.bf16 %v630_v1, %v628_v0 }
 0x210   :  { %888 = vmatprep.mubr.bf16.mxu1 %v634_v3 }
 0x211   :  { %889 = vmatmul.mubr.bf16.vlgmr.msra.gmra.mxu1 %v633_v4 }
 0x2c9   :  { %v880_v11 = vpop.f32.mrf.mxu0 }
 0x2ca   :  { %v881_v13 = vadd.f32 %v880_v11, %v681_v9 }
 0x2cb   :  { %v882_v36 = vpop.f32.mrf.mxu0 }
 0x2cc   :  { %899 = vst [vmem:[#allocation8] sm:$0xff] %v881_v13  ;;  %v883_v38 = vadd.f32 %v882_v36, %v685_v10 }
 0x2cd   :  { %v884_v39 = vpop.f32.mrf.mxu0 }
 0x2ce   :  { %900 = vst [vmem:[#allocation8 + $0x8] sm:$0xff] %v883_v38  ;;  %v885_v41 = vadd.f32 %v884_v39, %v681_v9 }
 0x2cf   :  { %v886_v12 = vpop.f32.mrf.mxu0 }
 0x2d0   :  { %901 = vst [vmem:[#allocation8 + $0x10] sm:$0xff] %v885_v41  ;;  %v887_v14 = vadd.f32 %v886_v12, %v685_v10 }
 0x2d1   :  { %v890_v15 = vpop.f32.mrf.mxu1 }
 0x2d2   :  { %902 = vst [vmem:[#allocation8 + $0x18] sm:$0xff] %v887_v14  ;;  %v891_v37 = vadd.f32 %v890_v15, %v681_v9 }
 0x2d3   :  { %v892_v16 = vpop.f32.mrf.mxu1 }
 0x2d4   :  { %903 = vst [vmem:[#allocation8 + $0x20] sm:$0xff] %v891_v37  ;;  %v893_v17 = vadd.f32 %v892_v16, %v685_v10 }
 0x2d5   :  { %v894_v40 = vpop.f32.mrf.mxu1 }
 0x2d6   :  { %904 = vst [vmem:[#allocation8 + $0x28] sm:$0xff] %v893_v17  ;;  %v895_v18 = vadd.f32 %v894_v40, %v681_v9 }
 0x2d7   :  { %v896_v19 = vpop.f32.mrf.mxu1 }
 0x2d8   :  { %905 = vst [vmem:[#allocation8 + $0x30] sm:$0xff] %v895_v18  ;;  %v897_v20 = vadd.f32 %v896_v19, %v685_v10 }
 0x2da   :  { %906 = vst [vmem:[#allocation8 + $0x38] sm:$0xff] %v897_v20 }
 0x2db   :  { %1276 = shalt.err (!%p1273_p5)
}
 0x2dc   :  { %918 = dma.vmem_to_hbm [thread:$0]  %s913_s2, 1024, %s1448_s3, [#allocation4], %s1295_s22, %s1295_s22, %s1296_s23  }
 0x2dd   :  { %1289 = dma.done.wait [#allocation4], 1024  }
 0x2de   :  { %1290 = vsyncadd [#allocation4], 4294966272 }
 0x2df   :  { %922 = vsyncpa [#allocation3], 1 }
 0x2e0   :  { %923 = vsyncpa [#allocation6], 1 }
 0x2e1   :  { %924 = vsyncpa [#allocation4], 1 }

// kernel: tpu_custom_call.1
= control target key start
LH: loop header
LB: loop body
LE: loop exit
PB: predicated region body
PF: predicated region fallthrough
CT: control target
= control target key end

     0   :  { %8 = vsyncpa [#allocation3], 0  ;;  %s1445_s0 = inlined_call_operand.hbm [shape: f32[32,256], index: 0, kind: input, shape index: {}]   ;;  %s1446_s1 = inlined_call_operand.hbm [shape: bf16[3,256,256], index: 1, kind: input, shape index: {}]   ;;  %s1447_s2 = inlined_call_operand.hbm [shape: f32[3,256], index: 2, kind: input, shape index: {}]   ;;  %s1448_s3 = inlined_call_operand.hbm [shape: f32[32,256], index: 3, kind: output, shape index: {}]  }
   0x1   :  { %9 = vsyncpa [#allocation6], 0 }
   0x2   :  { %10 = vsyncpa [#allocation4], 0  ;;  %s1291_s12 = smov [#allocation5]  }
   0x3   :  { %s28_s13 = sshll.u32 %s1291_s12, 4  ;;  %s29_s13 = int_to_ptr.vmem [resolvable:$true] %s28_s13 }
   0x4   :  { %s1213_s14 = scalar_lea.vmem %s29_s13, 12288  ;;  %p1218_p1 = scmp.lt.s32.totalorder %s29_s13, %s29_s13 }
   0x5   :  { %p1214_p0 = scmp.ne.s32.totalorder %s29_s13, %s1213_s14  ;;  %p1219_p2 = scmp.lt.s32.totalorder %s1213_s14, %s1213_s14 }
   0x7   :  { %p1220_p3 = por %p1219_p2, %p1218_p1 }
   0x9   :  { %p1221_p4 = pnand %p1220_p3, %p1214_p0 }
   0xb   :  { %1224 = shalt.err (!%p1221_p4)
}
   0xc   :  { %s1292_s15 = smov 128   ;;  %s1293_s16 = smov 8  }
   0xd   :  { %34 = dma.hbm_to_vmem [thread:$0]  %s1446_s1, 12288, %s29_s13, [#allocation6], %s1292_s15, %s1292_s15, %s1293_s16  }
   0xe   :  { %s1294_s19 = smov [#allocation2]  }
   0xf   :  { %s16_s20 = sshll.u32 %s1294_s19, 4  ;;  %s17_s20 = int_to_ptr.vmem [resolvable:$true] %s16_s20 }
  0x10   :  { %s1233_s21 = scalar_lea.vmem %s17_s20, 1024  ;;  %p1238_p6 = scmp.lt.s32.totalorder %s17_s20, %s17_s20 }
  0x11   :  { %p1234_p5 = scmp.ne.s32.totalorder %s17_s20, %s1233_s21  ;;  %p1239_p7 = scmp.lt.s32.totalorder %s1233_s21, %s1233_s21 }
  0x13   :  { %p1240_p8 = por %p1239_p7, %p1238_p6 }
  0x15   :  { %p1241_p9 = pnand %p1240_p8, %p1234_p5 }
  0x17   :  { %1244 = shalt.err (!%p1241_p9)
}
  0x18   :  { %s1295_s22 = smov 256   ;;  %s1296_s23 = smov 16  }
  0x19   :  { %22 = dma.hbm_to_vmem [thread:$0]  %s1445_s0, 1024, %s17_s20, [#allocation3], %s1295_s22, %s1295_s22, %s1296_s23  }
  0x1a   :  { %s1297_s1 = smov [#allocation7]  }
  0x1b   :  { %s41_s26 = sshll.u32 %s1297_s1, 4  ;;  %s42_s26 = int_to_ptr.vmem [resolvable:$true] %s41_s26 }
  0x1c   :  { %s1253_s27 = scalar_lea.vmem %s42_s26, 128  ;;  %p1258_p11 = scmp.lt.s32.totalorder %s42_s26, %s42_s26 }
  0x1d   :  { %p1254_p10 = scmp.ne.s32.totalorder %s42_s26, %s1253_s27  ;;  %p1259_p12 = scmp.lt.s32.totalorder %s1253_s27, %s1253_s27 }
  0x1f   :  { %p1260_p13 = por %p1259_p12, %p1258_p11 }
  0x21   :  { %p1261_p0 = pnand %p1260_p13, %p1254_p10 }
  0x23   :  { %1264 = shalt.err (!%p1261_p0)
}
  0x24   :  { %44 = dma.hbm_to_vmem [thread:$0]  %s1447_s2, 128, %s42_s26, [#allocation6]  }
  0x25   :  { %1285 = dma.done.wait [#allocation3], 1024  }
  0x26   :  { %1286 = vsyncadd [#allocation3], 4294966272 }
  0x27   :  { %1287 = dma.done.wait [#allocation6], 12416  }
  0x28   :  { %1288 = vsyncadd [#allocation6], 4294954880  ;;  %v1061_v0 = vld [vmem:[#allocation5 + $0x74] ss:$8 sps:$4 sm:$0xff]   ;;  %v1063_v1 = vld [vmem:[#allocation5 + $0x70] ss:$8 sps:$4 sm:$0xff]  }
  0x29   :  { %278 = vmatprep.subr.bf16.mxu0 %v1061_v0  ;;  %v1064_v2 = vld [vmem:[#allocation5 + $0x64] ss:$8 sps:$4 sm:$0xff]   ;;  %v1066_v3 = vld [vmem:[#allocation5 + $0x60] ss:$8 sps:$4 sm:$0xff]   ;;  %v1067_v4 = vld [vmem:[#allocation5 + $0x54] ss:$8 sps:$4 sm:$0xff]  }
  0x2a   :  { %279 = vmatpush1.bf16.msra.mxu0 %v1063_v1  ;;  %v1069_v5 = vld [vmem:[#allocation5 + $0x50] ss:$8 sps:$4 sm:$0xff]   ;;  %v1070_v6 = vld [vmem:[#allocation5 + $0x44] ss:$8 sps:$4 sm:$0xff]   ;;  %v1072_v7 = vld [vmem:[#allocation5 + $0x40] ss:$8 sps:$4 sm:$0xff]  }
  0x2b   :  { %280 = vmatprep.subr.bf16.mxu0 %v1064_v2  ;;  %v1073_v8 = vld [vmem:[#allocation5 + $0x34] ss:$8 sps:$4 sm:$0xff]   ;;  %v1075_v9 = vld [vmem:[#allocation5 + $0x30] ss:$8 sps:$4 sm:$0xff]   ;;  %v1076_v10 = vld [vmem:[#allocation5 + $0x24] ss:$8 sps:$4 sm:$0xff]  }
  0x2c   :  { %v1078_v11 = vld [vmem:[#allocation5 + $0x20] ss:$8 sps:$4 sm:$0xff]   ;;  %v1079_v12 = vld [vmem:[#allocation5 + $0x14] ss:$8 sps:$4 sm:$0xff]   ;;  %v1081_v16 = vld [vmem:[#allocation5 + $0x10] ss:$8 sps:$4 sm:$0xff]  }
  0x2d   :  { %v56_v13 = vld [vmem:[#allocation2 + $0x8] sm:$0xff]  ;;  %v58_v14 = vld [vmem:[#allocation2 + $0x18] sm:$0xff]  ;;  %v55_v54 = vld [vmem:[#allocation2] sm:$0xff]  ;;  %s1298_s0 = smov [#allocation8]  }
  0x2e   :  { %281 = vmatpush1.bf16.msra.mxu0 %v1066_v3  ;;  %v64_v15 = vpack.c.bf16 %v58_v14, %v56_v13  ;;  %v1082_v17 = vld [vmem:[#allocation5 + $0x4] ss:$8 sps:$4 sm:$0xff]   ;;  %v1109_v18 = vld [vmem:[#allocation5 + $0x174] ss:$8 sps:$4 sm:$0xff]   ;;  %v1111_v19 = vld [vmem:[#allocation5 + $0x170] ss:$8 sps:$4 sm:$0xff]  }
  0x2f   :  { %282 = vmatprep.subr.bf16.mxu0 %v1067_v4  ;;  %v1084_v20 = vld [vmem:[#allocation5] ss:$8 sps:$4 sm:$0xff]   ;;  %562 = vmatprep.subr.bf16.mxu1 %v1109_v18  ;;  %v1112_v21 = vld [vmem:[#allocation5 + $0x164] ss:$8 sps:$4 sm:$0xff]   ;;  %v1085_v22 = vld [vmem:[#allocation5 + $0xf4] ss:$8 sps:$4 sm:$0xff]  }
  0x30   :  { %310 = vmatprep.mubr.bf16.mxu0 %v64_v15  ;;  %563 = vmatpush1.bf16.msra.mxu1 %v1111_v19  ;;  %v1114_v23 = vld [vmem:[#allocation5 + $0x160] ss:$8 sps:$4 sm:$0xff]   ;;  %v1115_v24 = vld [vmem:[#allocation5 + $0x154] ss:$8 sps:$4 sm:$0xff]   ;;  %v1087_v25 = vld [vmem:[#allocation5 + $0xf0] ss:$8 sps:$4 sm:$0xff]  }
  0x31   :  { %564 = vmatprep.subr.bf16.mxu1 %v1112_v21  ;;  %v1088_v26 = vld [vmem:[#allocation5 + $0xe4] ss:$8 sps:$4 sm:$0xff]   ;;  %v1117_v27 = vld [vmem:[#allocation5 + $0x150] ss:$8 sps:$4 sm:$0xff]   ;;  %v1090_v29 = vld [vmem:[#allocation5 + $0xe0] ss:$8 sps:$4 sm:$0xff]  }
  0x32   :  { %283 = vmatpush1.bf16.msra.mxu0 %v1069_v5  ;;  %v1118_v28 = vld [vmem:[#allocation5 + $0x144] ss:$8 sps:$4 sm:$0xff]   ;;  %v1091_v30 = vld [vmem:[#allocation5 + $0xd4] ss:$8 sps:$4 sm:$0xff]   ;;  %v1120_v31 = vld [vmem:[#allocation5 + $0x140] ss:$8 sps:$4 sm:$0xff]  }
  0x33   :  { %284 = vmatprep.subr.bf16.mxu0 %v1070_v6  ;;  %v1121_v32 = vld [vmem:[#allocation5 + $0x134] ss:$8 sps:$4 sm:$0xff]   ;;  %v1093_v33 = vld [vmem:[#allocation5 + $0xd0] ss:$8 sps:$4 sm:$0xff]   ;;  %v1094_v34 = vld [vmem:[#allocation5 + $0xc4] ss:$8 sps:$4 sm:$0xff]  }
  0x34   :  { %565 = vmatpush1.bf16.msra.mxu1 %v1114_v23  ;;  %v1123_v35 = vld [vmem:[#allocation5 + $0x130] ss:$8 sps:$4 sm:$0xff]   ;;  %v1124_v36 = vld [vmem:[#allocation5 + $0x124] ss:$8 sps:$4 sm:$0xff]   ;;  %v1096_v37 = vld [vmem:[#allocation5 + $0xc0] ss:$8 sps:$4 sm:$0xff]  }
  0x35   :  { %566 = vmatprep.subr.bf16.mxu1 %v1115_v24  ;;  %v1126_v38 = vld [vmem:[#allocation5 + $0x120] ss:$8 sps:$4 sm:$0xff]   ;;  %v1097_v39 = vld [vmem:[#allocation5 + $0xb4] ss:$8 sps:$4 sm:$0xff]   ;;  %v1099_v41 = vld [vmem:[#allocation5 + $0xb0] ss:$8 sps:$4 sm:$0xff]  }
  0x36   :  { %285 = vmatpush1.bf16.msra.mxu0 %v1072_v7  ;;  %v1127_v40 = vld [vmem:[#allocation5 + $0x114] ss:$8 sps:$4 sm:$0xff]   ;;  %v1129_v42 = vld [vmem:[#allocation5 + $0x110] ss:$8 sps:$4 sm:$0xff]   ;;  %v1100_v43 = vld [vmem:[#allocation5 + $0xa4] ss:$8 sps:$4 sm:$0xff]  }
  0x37   :  { %286 = vmatprep.subr.bf16.mxu0 %v1073_v8  ;;  %v1130_v44 = vld [vmem:[#allocation5 + $0x104] ss:$8 sps:$4 sm:$0xff]   ;;  %v1102_v45 = vld [vmem:[#allocation5 + $0xa0] ss:$8 sps:$4 sm:$0xff]   ;;  %v1103_v47 = vld [vmem:[#allocation5 + $0x94] ss:$8 sps:$4 sm:$0xff]  }
  0x38   :  { %567 = vmatpush1.bf16.msra.mxu1 %v1117_v27  ;;  %v1132_v46 = vld [vmem:[#allocation5 + $0x100] ss:$8 sps:$4 sm:$0xff]   ;;  %v1133_v48 = vld [vmem:[#allocation5 + $0x1f4] ss:$8 sps:$4 sm:$0xff]   ;;  %v1105_v49 = vld [vmem:[#allocation5 + $0x90] ss:$8 sps:$4 sm:$0xff]  }
  0x39   :  { %568 = vmatprep.subr.bf16.mxu1 %v1118_v28  ;;  %v1135_v50 = vld [vmem:[#allocation5 + $0x1f0] ss:$8 sps:$4 sm:$0xff]   ;;  %v1106_v51 = vld [vmem:[#allocation5 + $0x84] ss:$8 sps:$4 sm:$0xff]   ;;  %v1108_v53 = vld [vmem:[#allocation5 + $0x80] ss:$8 sps:$4 sm:$0xff]  }
  0x3a   :  { %287 = vmatpush1.bf16.msra.mxu0 %v1075_v9  ;;  %v1136_v52 = vld [vmem:[#allocation5 + $0x1e4] ss:$8 sps:$4 sm:$0xff]   ;;  %v57_v55 = vld [vmem:[#allocation2 + $0x10] sm:$0xff]  ;;  %v1138_v56 = vld [vmem:[#allocation5 + $0x1e0] ss:$8 sps:$4 sm:$0xff]   ;;  %s912_s2 = sshll.u32 %s1298_s0, 4  ;;  %s913_s2 = int_to_ptr.vmem [resolvable:$true] %s912_s2 }
  0x3b   :  { %288 = vmatprep.subr.bf16.mxu0 %v1076_v10  ;;  %v60_v57 = vld [vmem:[#allocation2 + $0x28] sm:$0xff]  ;;  %v62_v58 = vld [vmem:[#allocation2 + $0x38] sm:$0xff]  ;;  %v63_v60 = vpack.c.bf16 %v57_v55, %v55_v54  ;;  %v59_v0 = vld [vmem:[#allocation2 + $0x20] sm:$0xff]  ;;  %s1265_s30 = scalar_lea.vmem %s913_s2, 1024  ;;  %p1270_p2 = scmp.lt.s32.totalorder %s913_s2, %s913_s2 }
  0x3c   :  { %569 = vmatpush1.bf16.msra.mxu1 %v1120_v31  ;;  %v1139_v59 = vld [vmem:[#allocation5 + $0x1d4] ss:$8 sps:$4 sm:$0xff]   ;;  %v66_v61 = vpack.c.bf16 %v62_v58, %v60_v57  ;;  %v1141_v62 = vld [vmem:[#allocation5 + $0x1d0] ss:$8 sps:$4 sm:$0xff]   ;;  %v1142_v63 = vld [vmem:[#allocation5 + $0x1c4] ss:$8 sps:$4 sm:$0xff]   ;;  %p1266_p1 = scmp.ne.s32.totalorder %s913_s2, %s1265_s30  ;;  %p1271_p3 = scmp.lt.s32.totalorder %s1265_s30, %s1265_s30 }
  0x3d   :  { %570 = vmatprep.subr.bf16.mxu1 %v1121_v32  ;;  %v61_v1 = vld [vmem:[#allocation2 + $0x30] sm:$0xff]  ;;  %v1144_v2 = vld [vmem:[#allocation5 + $0x1c0] ss:$8 sps:$4 sm:$0xff]   ;;  %v1148_v6 = vld [vmem:[#allocation5 + $0x1a4] ss:$8 sps:$4 sm:$0xff]  }
  0x3e   :  { %289 = vmatpush1.bf16.msra.mxu0 %v1078_v11  ;;  %v65_v3 = vpack.c.bf16 %v61_v1, %v59_v0  ;;  %v1145_v4 = vld [vmem:[#allocation5 + $0x1b4] ss:$8 sps:$4 sm:$0xff]   ;;  %v1147_v5 = vld [vmem:[#allocation5 + $0x1b0] ss:$8 sps:$4 sm:$0xff]   ;;  %v1150_v7 = vld [vmem:[#allocation5 + $0x1a0] ss:$8 sps:$4 sm:$0xff]   ;;  %p1272_p4 = por %p1271_p3, %p1270_p2 }
  0x3f   :  { %290 = vmatprep.subr.bf16.mxu0 %v1079_v12  ;;  %v1151_v8 = vld [vmem:[#allocation5 + $0x194] ss:$8 sps:$4 sm:$0xff]   ;;  %v1153_v9 = vld [vmem:[#allocation5 + $0x190] ss:$8 sps:$4 sm:$0xff]   ;;  %v1154_v10 = vld [vmem:[#allocation5 + $0x184] ss:$8 sps:$4 sm:$0xff]  }
  0x40   :  { %571 = vmatpush1.bf16.msra.mxu1 %v1123_v35  ;;  %v1156_v11 = vld [vmem:[#allocation5 + $0x180] ss:$8 sps:$4 sm:$0xff]   ;;  %v1331_v12 = vld [vmem:[#allocation5 + $0x270] ss:$8 sps:$4 sm:$0xff]   ;;  %v1159_v13 = vld [vmem:[#allocation5 + $0x274] ss:$8 sps:$4 sm:$0xff]   ;;  %p1273_p5 = pnand %p1272_p4, %p1266_p1 }
  0x41   :  { %572 = vmatprep.subr.bf16.mxu1 %v1124_v36  ;;  %v1333_v14 = vld [vmem:[#allocation5 + $0x264] ss:$8 sps:$4 sm:$0xff]   ;;  %v1336_v15 = vld [vmem:[#allocation5 + $0x260] ss:$8 sps:$4 sm:$0xff]   ;;  %v1354_v21 = vld [vmem:[#allocation5 + $0x230] ss:$8 sps:$4 sm:$0xff]   ;;  %v100_v36 = vlaneseq }
  0x42   :  { %291 = vmatpush1.bf16.msra.mxu0 %v1081_v16  ;;  %v1339_v16 = vld [vmem:[#allocation5 + $0x254] ss:$8 sps:$4 sm:$0xff]   ;;  %v1345_v18 = vld [vmem:[#allocation5 + $0x244] ss:$8 sps:$4 sm:$0xff]   ;;  %v1348_v19 = vld [vmem:[#allocation5 + $0x240] ss:$8 sps:$4 sm:$0xff]  }
  0x43   :  { %292 = vmatprep.subr.bf16.mxu0 %v1082_v17  ;;  %v1342_v17 = vld [vmem:[#allocation5 + $0x250] ss:$8 sps:$4 sm:$0xff]   ;;  %v1360_v23 = vld [vmem:[#allocation5 + $0x220] ss:$8 sps:$4 sm:$0xff]   ;;  %v1363_v24 = vld [vmem:[#allocation5 + $0x214] ss:$8 sps:$4 sm:$0xff]  }
  0x44   :  { %573 = vmatpush1.bf16.msra.mxu1 %v1126_v38  ;;  %v1372_v27 = vld [vmem:[#allocation5 + $0x200] ss:$8 sps:$4 sm:$0xff]   ;;  %v1375_v28 = vld [vmem:[#allocation5 + $0x2f4] ss:$8 sps:$4 sm:$0xff]  }
  0x45   :  { %574 = vmatprep.subr.bf16.mxu1 %v1127_v40  ;;  %v1384_v31 = vld [vmem:[#allocation5 + $0x2e0] ss:$8 sps:$4 sm:$0xff]   ;;  %v1387_v32 = vld [vmem:[#allocation5 + $0x2d4] ss:$8 sps:$4 sm:$0xff]  }
  0x46   :  { %293 = vmatpush1.bf16.msra.mxu0 %v1084_v20  ;;  %v1351_v20 = vld [vmem:[#allocation5 + $0x234] ss:$8 sps:$4 sm:$0xff]   ;;  %v1396_v35 = vld [vmem:[#allocation5 + $0x2c0] ss:$8 sps:$4 sm:$0xff]  }
  0x47   :  { %294 = vmatprep.subr.bf16.mxu0 %v1085_v22  ;;  %v1357_v22 = vld [vmem:[#allocation5 + $0x224] ss:$8 sps:$4 sm:$0xff]  }
  0x48   :  { %575 = vmatpush1.bf16.msra.mxu1 %v1129_v42  ;;  %v1404_v40 = vld [vmem:[#allocation7] sm:$0x77] }
  0x49   :  { %576 = vmatprep.subr.bf16.mxu1 %v1130_v44 }
  0x4a   :  { %295 = vmatpush2.bf16.msra.mxu0 %v1087_v25  ;;  %v1366_v25 = vld [vmem:[#allocation5 + $0x210] ss:$8 sps:$4 sm:$0xff]  }
  0x4b   :  { %296 = vmatprep.subr.bf16.mxu0 %v1088_v26  ;;  %v1369_v26 = vld [vmem:[#allocation5 + $0x204] ss:$8 sps:$4 sm:$0xff]  }
  0x4c   :  { %577 = vmatpush1.bf16.msra.mxu1 %v1132_v46 }
  0x4d   :  { %578 = vmatprep.subr.bf16.mxu1 %v1133_v48 }
  0x4e   :  { %297 = vmatpush2.bf16.msra.mxu0 %v1090_v29  ;;  %v1378_v29 = vld [vmem:[#allocation5 + $0x2f0] ss:$8 sps:$4 sm:$0xff]  }
  0x4f   :  { %298 = vmatprep.subr.bf16.mxu0 %v1091_v30  ;;  %v1381_v30 = vld [vmem:[#allocation5 + $0x2e4] ss:$8 sps:$4 sm:$0xff]  }
  0x50   :  { %579 = vmatpush2.bf16.msra.mxu1 %v1135_v50 }
  0x51   :  { %580 = vmatprep.subr.bf16.mxu1 %v1136_v52 }
  0x52   :  { %299 = vmatpush2.bf16.msra.mxu0 %v1093_v33  ;;  %v1390_v33 = vld [vmem:[#allocation5 + $0x2d0] ss:$8 sps:$4 sm:$0xff]  }
  0x53   :  { %300 = vmatprep.subr.bf16.mxu0 %v1094_v34  ;;  %v1393_v34 = vld [vmem:[#allocation5 + $0x2c4] ss:$8 sps:$4 sm:$0xff]  }
  0x54   :  { %581 = vmatpush2.bf16.msra.mxu1 %v1138_v56 }
  0x55   :  { %582 = vmatprep.subr.bf16.mxu1 %v1139_v59 }
  0x56   :  { %301 = vmatpush2.bf16.msra.mxu0 %v1096_v37  ;;  %v1400_v37 = vshrl.u32 %v100_v36, 7 }
  0x57   :  { %302 = vmatprep.subr.bf16.mxu0 %v1097_v39 }
  0x58   :  { %583 = vmatpush2.bf16.msra.mxu1 %v1141_v62  ;;  %v106_v38 = vsub.s32 4, %v1400_v37  ;;  %v102_v39 = vsub.s32 0, %v1400_v37 }
  0x59   :  { %584 = vmatprep.subr.bf16.mxu1 %v1142_v63 }
  0x5a   :  { %303 = vmatpush2.bf16.msra.mxu0 %v1099_v41  ;;  %v107_v41 = vrot.slane %v1404_v40, %v106_v38  ;;  %v103_v42 = vrot.slane %v1404_v40, %v102_v39 }
  0x5b   :  { %304 = vmatprep.subr.bf16.mxu0 %v1100_v43 }
  0x5c   :  { %585 = vmatpush2.bf16.msra.mxu1 %v1144_v2  ;;  %v117_v43 = vrot.slane %v107_v41, %v102_v39  ;;  %v113_v44 = vrot.slane %v103_v42, %v102_v39 }
  0x5d   :  { %586 = vmatprep.subr.bf16.mxu1 %v1145_v4 }
  0x5e   :  { %305 = vmatpush2.bf16.msra.mxu0 %v1102_v45 }
  0x5f   :  { %306 = vmatprep.subr.bf16.mxu0 %v1103_v47 }
  0x60   :  { %587 = vmatpush2.bf16.msra.mxu1 %v1147_v5 }
  0x61   :  { %588 = vmatprep.subr.bf16.mxu1 %v1148_v6 }
  0x62   :  { %307 = vmatpush2.bf16.msra.mxu0 %v1105_v49 }
  0x63   :  { %308 = vmatprep.subr.bf16.mxu0 %v1106_v51 }
  0x64   :  { %589 = vmatpush2.bf16.msra.mxu1 %v1150_v7 }
  0x65   :  { %590 = vmatprep.subr.bf16.mxu1 %v1151_v8 }
  0x66   :  { %309 = vmatpush2.bf16.msra.mxu0 %v1108_v53 }
  0x67   :  { %846 = vmatprep.subr.bf16.mxu0 %v1159_v13 }
  0x68   :  { %591 = vmatpush2.bf16.msra.mxu1 %v1153_v9 }
  0x69   :  { %311 = vmatmul.mubr.bf16.vlgmr.msra.gmra.mxu0 %v63_v60  ;;  %592 = vmatprep.subr.bf16.mxu1 %v1154_v10 }
  0x6a   :  { %320 = vmatprep.mubr.bf16.mxu0 %v66_v61  ;;  %847 = vmatpush1.bf16.msra.mxu0 %v1331_v12 }
  0x6b   :  { %848 = vmatprep.subr.bf16.mxu0 %v1333_v14 }
  0x6c   :  { %593 = vmatpush2.bf16.msra.mxu1 %v1156_v11 }
  0x6d   :  { %1021 = vmatprep.subr.bf16.mxu1 %v1159_v13 }
  0x6e   :  { %849 = vmatpush1.bf16.msra.mxu0 %v1336_v15 }
  0x6f   :  { %850 = vmatprep.subr.bf16.mxu0 %v1339_v16 }
  0x71   :  { %321 = vmatmul.mubr.bf16.gmra.mxu0 %v65_v3 }
  0x72   :  { %851 = vmatpush1.bf16.msra.mxu0 %v1342_v17 }
  0x73   :  { %852 = vmatprep.subr.bf16.mxu0 %v1345_v18 }
  0x76   :  { %853 = vmatpush1.bf16.msra.mxu0 %v1348_v19 }
  0x77   :  { %854 = vmatprep.subr.bf16.mxu0 %v1351_v20 }
  0x7a   :  { %855 = vmatpush1.bf16.msra.mxu0 %v1354_v21 }
  0x7b   :  { %856 = vmatprep.subr.bf16.mxu0 %v1357_v22 }
  0x7e   :  { %857 = vmatpush1.bf16.msra.mxu0 %v1360_v23 }
  0x7f   :  { %858 = vmatprep.subr.bf16.mxu0 %v1363_v24 }
  0x82   :  { %859 = vmatpush1.bf16.msra.mxu0 %v1366_v25 }
  0x83   :  { %860 = vmatprep.subr.bf16.mxu0 %v1369_v26 }
  0x86   :  { %861 = vmatpush1.bf16.msra.mxu0 %v1372_v27 }
  0x87   :  { %862 = vmatprep.subr.bf16.mxu0 %v1375_v28 }
  0x8a   :  { %863 = vmatpush2.bf16.msra.mxu0 %v1378_v29 }
  0x8b   :  { %864 = vmatprep.subr.bf16.mxu0 %v1381_v30 }
  0x8e   :  { %865 = vmatpush2.bf16.msra.mxu0 %v1384_v31 }
  0x8f   :  { %866 = vmatprep.subr.bf16.mxu0 %v1387_v32 }
  0x92   :  { %867 = vmatpush2.bf16.msra.mxu0 %v1390_v33 }
  0x93   :  { %868 = vmatprep.subr.bf16.mxu0 %v1393_v34 }
  0x96   :  { %869 = vmatpush2.bf16.msra.mxu0 %v1396_v35 }
 0x129   :  { %v312_v45 = vpop.f32.mrf.mxu0 }
 0x12a   :  { %v313_v48 = vadd.f32 %v312_v45, %v113_v44 }
 0x12b   :  { %v314_v46 = vpop.f32.mrf.mxu0 }
 0x12c   :  { %v315_v47 = vadd.f32 %v314_v46, %v117_v43  ;;  %v331_v55 = vmul.f32 0.01, %v313_v48 }
 0x12d   :  { %v316_v49 = vpop.f32.mrf.mxu0 }
 0x12e   :  { %v317_v50 = vadd.f32 %v316_v49, %v113_v44  ;;  %v332_v52 = vmul.f32 0.01, %v315_v47  ;;  %v339_v63 = vmax.f32 %v313_v48, %v331_v55 }
 0x12f   :  { %v318_v51 = vpop.f32.mrf.mxu0 }
 0x130   :  { %v333_v53 = vmul.f32 0.01, %v317_v50  ;;  %v319_v54 = vadd.f32 %v318_v51, %v117_v43  ;;  %v340_v61 = vmax.f32 %v315_v47, %v332_v52 }
 0x131   :  { %v322_v56 = vpop.f32.mrf.mxu0 }
 0x132   :  { %v334_v57 = vmul.f32 0.01, %v319_v54  ;;  %v341_v58 = vmax.f32 %v317_v50, %v333_v53  ;;  %v323_v0 = vadd.f32 %v322_v56, %v113_v44 }
 0x133   :  { %v324_v59 = vpop.f32.mrf.mxu0 }
 0x134   :  { %v325_v60 = vadd.f32 %v324_v59, %v117_v43  ;;  %v342_v62 = vmax.f32 %v319_v54, %v334_v57  ;;  %v347_v5 = vpack.c.bf16 %v341_v58, %v339_v63  ;;  %v335_v9 = vmul.f32 0.01, %v323_v0 }
 0x135   :  { %v326_v1 = vpop.f32.mrf.mxu0 }
 0x136   :  { %v327_v2 = vadd.f32 %v326_v1, %v113_v44  ;;  %v348_v3 = vpack.c.bf16 %v342_v62, %v340_v61  ;;  %v336_v6 = vmul.f32 0.01, %v325_v60  ;;  %v343_v38 = vmax.f32 %v323_v0, %v335_v9 }
 0x137   :  { %v328_v4 = vpop.f32.mrf.mxu0 }
 0x138   :  { %v337_v7 = vmul.f32 0.01, %v327_v2  ;;  %v329_v8 = vadd.f32 %v328_v4, %v117_v43  ;;  %594 = vmatprep.mubr.bf16.mxu1 %v348_v3  ;;  %v344_v13 = vmax.f32 %v325_v60, %v336_v6  ;;  %v674_v6 = vsub.s32 6, %v1400_v37 }
 0x139   :  { %595 = vmatmul.mubr.bf16.vlgmr.msra.gmra.mxu1 %v347_v5  ;;  %v670_v5 = vsub.s32 2, %v1400_v37 }
 0x13a   :  { %v338_v10 = vmul.f32 0.01, %v329_v8  ;;  %1037 = vmatpush1.bf16.msra.mxu1 %v1331_v12  ;;  %v345_v11 = vmax.f32 %v327_v2, %v337_v7  ;;  %v1195_v12 = vld [vmem:[#allocation5 + $0x2b4] ss:$8 sps:$4 sm:$0xff]  }
 0x13b   :  { %1022 = vmatprep.subr.bf16.mxu1 %v1333_v14  ;;  %v1193_v14 = vld [vmem:[#allocation5 + $0x2b0] ss:$8 sps:$4 sm:$0xff]   ;;  %870 = vmatprep.subr.bf16.mxu0 %v1195_v12  ;;  %v671_v7 = vrot.slane %v1404_v40, %v670_v5 }
 0x13c   :  { %v346_v36 = vmax.f32 %v329_v8, %v338_v10  ;;  %v349_v41 = vpack.c.bf16 %v345_v11, %v343_v38  ;;  %871 = vmatpush2.bf16.msra.mxu0 %v1193_v14  ;;  %v675_v8 = vrot.slane %v1404_v40, %v674_v6 }
 0x13d   :  { %v681_v9 = vrot.slane %v671_v7, %v670_v5 }
 0x13e   :  { %v350_v39 = vpack.c.bf16 %v346_v36, %v344_v13  ;;  %1038 = vmatpush1.bf16.msra.mxu1 %v1336_v15  ;;  %v1198_v15 = vld [vmem:[#allocation5 + $0x2a4] ss:$8 sps:$4 sm:$0xff]   ;;  %v685_v10 = vrot.slane %v675_v8, %v670_v5 }
 0x13f   :  { %1023 = vmatprep.subr.bf16.mxu1 %v1339_v16  ;;  %v1196_v16 = vld [vmem:[#allocation5 + $0x2a0] ss:$8 sps:$4 sm:$0xff]   ;;  %872 = vmatprep.subr.bf16.mxu0 %v1198_v15 }
 0x140   :  { %604 = vmatprep.mubr.bf16.mxu1 %v350_v39  ;;  %873 = vmatpush2.bf16.msra.mxu0 %v1196_v16 }
 0x141   :  { %605 = vmatmul.mubr.bf16.gmra.mxu1 %v349_v41 }
 0x142   :  { %1039 = vmatpush1.bf16.msra.mxu1 %v1342_v17  ;;  %v1201_v17 = vld [vmem:[#allocation5 + $0x294] ss:$8 sps:$4 sm:$0xff]  }
 0x143   :  { %1024 = vmatprep.subr.bf16.mxu1 %v1345_v18  ;;  %v1199_v18 = vld [vmem:[#allocation5 + $0x290] ss:$8 sps:$4 sm:$0xff]   ;;  %874 = vmatprep.subr.bf16.mxu0 %v1201_v17 }
 0x144   :  { %875 = vmatpush2.bf16.msra.mxu0 %v1199_v18 }
 0x146   :  { %1040 = vmatpush1.bf16.msra.mxu1 %v1348_v19  ;;  %v1204_v19 = vld [vmem:[#allocation5 + $0x284] ss:$8 sps:$4 sm:$0xff]  }
 0x147   :  { %1025 = vmatprep.subr.bf16.mxu1 %v1351_v20  ;;  %v1202_v20 = vld [vmem:[#allocation5 + $0x280] ss:$8 sps:$4 sm:$0xff]   ;;  %876 = vmatprep.subr.bf16.mxu0 %v1204_v19 }
 0x148   :  { %877 = vmatpush2.bf16.msra.mxu0 %v1202_v20 }
 0x14a   :  { %1041 = vmatpush1.bf16.msra.mxu1 %v1354_v21  ;;  %v390_v21 = vsub.s32 5, %v1400_v37 }
 0x14b   :  { %1026 = vmatprep.subr.bf16.mxu1 %v1357_v22  ;;  %v386_v22 = vsub.s32 1, %v1400_v37 }
 0x14e   :  { %1042 = vmatpush1.bf16.msra.mxu1 %v1360_v23  ;;  %v391_v23 = vrot.slane %v1404_v40, %v390_v21 }
 0x14f   :  { %1027 = vmatprep.subr.bf16.mxu1 %v1363_v24  ;;  %v387_v24 = vrot.slane %v1404_v40, %v386_v22 }
 0x152   :  { %1043 = vmatpush1.bf16.msra.mxu1 %v1366_v25  ;;  %v401_v25 = vrot.slane %v391_v23, %v386_v22 }
 0x153   :  { %1028 = vmatprep.subr.bf16.mxu1 %v1369_v26  ;;  %v397_v26 = vrot.slane %v387_v24, %v386_v22 }
 0x156   :  { %1044 = vmatpush1.bf16.msra.mxu1 %v1372_v27 }
 0x157   :  { %1029 = vmatprep.subr.bf16.mxu1 %v1375_v28 }
 0x15a   :  { %1045 = vmatpush2.bf16.msra.mxu1 %v1378_v29 }
 0x15b   :  { %1030 = vmatprep.subr.bf16.mxu1 %v1381_v30 }
 0x15e   :  { %1046 = vmatpush2.bf16.msra.mxu1 %v1384_v31 }
 0x15f   :  { %1031 = vmatprep.subr.bf16.mxu1 %v1387_v32 }
 0x162   :  { %1047 = vmatpush2.bf16.msra.mxu1 %v1390_v33 }
 0x163   :  { %1032 = vmatprep.subr.bf16.mxu1 %v1393_v34 }
 0x166   :  { %1048 = vmatpush2.bf16.msra.mxu1 %v1396_v35 }
 0x167   :  { %1033 = vmatprep.subr.bf16.mxu1 %v1195_v12 }
 0x16a   :  { %1049 = vmatpush2.bf16.msra.mxu1 %v1193_v14 }
 0x16b   :  { %1034 = vmatprep.subr.bf16.mxu1 %v1198_v15 }
 0x16e   :  { %1050 = vmatpush2.bf16.msra.mxu1 %v1196_v16 }
 0x16f   :  { %1035 = vmatprep.subr.bf16.mxu1 %v1201_v17 }
 0x172   :  { %1051 = vmatpush2.bf16.msra.mxu1 %v1199_v18 }
 0x173   :  { %1036 = vmatprep.subr.bf16.mxu1 %v1204_v19 }
 0x176   :  { %1052 = vmatpush2.bf16.msra.mxu1 %v1202_v20 }
 0x1f9   :  { %v596_v27 = vpop.f32.mrf.mxu1 }
 0x1fa   :  { %v597_v30 = vadd.f32 %v596_v27, %v397_v26 }
 0x1fb   :  { %v598_v28 = vpop.f32.mrf.mxu1 }
 0x1fc   :  { %v599_v29 = vadd.f32 %v598_v28, %v401_v25  ;;  %v615_v43 = vmul.f32 0.01, %v597_v30 }
 0x1fd   :  { %v600_v31 = vpop.f32.mrf.mxu1 }
 0x1fe   :  { %v601_v32 = vadd.f32 %v600_v31, %v397_v26  ;;  %v616_v34 = vmul.f32 0.01, %v599_v29  ;;  %v623_v51 = vmax.f32 %v597_v30, %v615_v43 }
 0x1ff   :  { %v602_v33 = vpop.f32.mrf.mxu1 }
 0x200   :  { %v617_v35 = vmul.f32 0.01, %v601_v32  ;;  %v603_v42 = vadd.f32 %v602_v33, %v401_v25  ;;  %v624_v48 = vmax.f32 %v599_v29, %v616_v34 }
 0x201   :  { %v606_v44 = vpop.f32.mrf.mxu1 }
 0x202   :  { %v618_v45 = vmul.f32 0.01, %v603_v42  ;;  %v625_v46 = vmax.f32 %v601_v32, %v617_v35  ;;  %v607_v52 = vadd.f32 %v606_v44, %v397_v26 }
 0x203   :  { %v608_v47 = vpop.f32.mrf.mxu1 }
 0x204   :  { %v626_v49 = vmax.f32 %v603_v42, %v618_v45  ;;  %v609_v50 = vadd.f32 %v608_v47, %v401_v25  ;;  %v631_v56 = vpack.c.bf16 %v625_v46, %v623_v51  ;;  %v619_v61 = vmul.f32 0.01, %v607_v52 }
 0x205   :  { %v610_v53 = vpop.f32.mrf.mxu1 }
 0x206   :  { %v611_v54 = vadd.f32 %v610_v53, %v397_v26  ;;  %v632_v55 = vpack.c.bf16 %v626_v49, %v624_v48  ;;  %v620_v58 = vmul.f32 0.01, %v609_v50  ;;  %v627_v2 = vmax.f32 %v607_v52, %v619_v61 }
 0x207   :  { %v612_v57 = vpop.f32.mrf.mxu1 }
 0x208   :  { %v621_v59 = vmul.f32 0.01, %v611_v54  ;;  %v613_v60 = vadd.f32 %v612_v57, %v401_v25  ;;  %878 = vmatprep.mubr.bf16.mxu0 %v632_v55  ;;  %v628_v0 = vmax.f32 %v609_v50, %v620_v58 }
 0x209   :  { %879 = vmatmul.mubr.bf16.vlgmr.msra.gmra.mxu0 %v631_v56 }
 0x20a   :  { %v622_v62 = vmul.f32 0.01, %v613_v60  ;;  %v629_v63 = vmax.f32 %v611_v54, %v621_v59 }
 0x20c   :  { %v630_v1 = vmax.f32 %v613_v60, %v622_v62  ;;  %v633_v4 = vpack.c.bf16 %v629_v63, %v627_v2 }
 0x20e   :  { %v634_v3 = vpack.c.bf16 %v630_v1, %v628_v0 }
 0x210   :  { %888 = vmatprep.mubr.bf16.mxu1 %v634_v3 }
 0x211   :  { %889 = vmatmul.mubr.bf16.vlgmr.msra.gmra.mxu1 %v633_v4 }
 0x2c9   :  { %v880_v11 = vpop.f32.mrf.mxu0 }
 0x2ca   :  { %v881_v13 = vadd.f32 %v880_v11, %v681_v9 }
 0x2cb   :  { %v882_v36 = vpop.f32.mrf.mxu0 }
 0x2cc   :  { %899 = vst [vmem:[#allocation8] sm:$0xff] %v881_v13  ;;  %v883_v38 = vadd.f32 %v882_v36, %v685_v10 }
 0x2cd   :  { %v884_v39 = vpop.f32.mrf.mxu0 }
 0x2ce   :  { %900 = vst [vmem:[#allocation8 + $0x8] sm:$0xff] %v883_v38  ;;  %v885_v41 = vadd.f32 %v884_v39, %v681_v9 }
 0x2cf   :  { %v886_v12 = vpop.f32.mrf.mxu0 }
 0x2d0   :  { %901 = vst [vmem:[#allocation8 + $0x10] sm:$0xff] %v885_v41  ;;  %v887_v14 = vadd.f32 %v886_v12, %v685_v10 }
 0x2d1   :  { %v890_v15 = vpop.f32.mrf.mxu1 }
 0x2d2   :  { %902 = vst [vmem:[#allocation8 + $0x18] sm:$0xff] %v887_v14  ;;  %v891_v37 = vadd.f32 %v890_v15, %v681_v9 }
 0x2d3   :  { %v892_v16 = vpop.f32.mrf.mxu1 }
 0x2d4   :  { %903 = vst [vmem:[#allocation8 + $0x20] sm:$0xff] %v891_v37  ;;  %v893_v17 = vadd.f32 %v892_v16, %v685_v10 }
 0x2d5   :  { %v894_v40 = vpop.f32.mrf.mxu1 }
 0x2d6   :  { %904 = vst [vmem:[#allocation8 + $0x28] sm:$0xff] %v893_v17  ;;  %v895_v18 = vadd.f32 %v894_v40, %v681_v9 }
 0x2d7   :  { %v896_v19 = vpop.f32.mrf.mxu1 }
 0x2d8   :  { %905 = vst [vmem:[#allocation8 + $0x30] sm:$0xff] %v895_v18  ;;  %v897_v20 = vadd.f32 %v896_v19, %v685_v10 }
 0x2da   :  { %906 = vst [vmem:[#allocation8 + $0x38] sm:$0xff] %v897_v20 }
 0x2db   :  { %1276 = shalt.err (!%p1273_p5)
}
 0x2dc   :  { %918 = dma.vmem_to_hbm [thread:$0]  %s913_s2, 1024, %s1448_s3, [#allocation4], %s1295_s22, %s1295_s22, %s1296_s23  }
 0x2dd   :  { %1289 = dma.done.wait [#allocation4], 1024  }
 0x2de   :  { %1290 = vsyncadd [#allocation4], 4294966272 }
 0x2df   :  { %922 = vsyncpa [#allocation3], 1 }
 0x2e0   :  { %923 = vsyncpa [#allocation6], 1 }
 0x2e1   :  { %924 = vsyncpa [#allocation4], 1 }

</bundles_post_ra>
